<compile_context>
chip_gen: v7x
topology: tpu7x:2x2x1
jax: 0.10.0
libtpu: 0.0.40
codegen_flags: <defaults>
</compile_context>

<pallas_src>
import math

import jax
import jax.numpy as jnp
from jax.experimental import pallas as pl
from jax.experimental.pallas import tpu as pltpu  # noqa: F401  (TPU backend)

# ---- model hyper-parameters (small, consistent with the module) -------------
VOCAB = 50
D = 32          # embedding_dim
MLP = 64        # mlp_dim
H = 4           # num_heads
HD = D // H     # head_dim
N_LAYERS = 2
B = 2
S = 8
EPS = 1e-5      # nn.LayerNorm default eps

_SQRT_2_OVER_PI = math.sqrt(2.0 / math.pi)
# (b, m, k) @ (b, k, n) -> (b, m, n)
_BMM = (((2,), (1,)), ((0,), (0,)))
# (b, m, k) @ (b, n, k) -> (b, m, n)   (contract last dims; rhs "transposed")
_BMM_T = (((2,), (2,)), ((0,), (0,)))


# ---- in-kernel math helpers (f32 elementwise) --------------------------------
def _layernorm(x, g, b):
    mu = jnp.mean(x, axis=-1, keepdims=True)
    var = jnp.mean((x - mu) ** 2, axis=-1, keepdims=True)
    return (x - mu) * jax.lax.rsqrt(var + EPS) * g + b


def _gelu(x):
    # tanh-approx GELU: transcendental goes to the EUP slot instead of a
    # VALU erf polynomial.  Tiny numerics delta vs exact F.gelu.
    return 0.5 * x * (1.0 + jnp.tanh(_SQRT_2_OVER_PI * (x + 0.044715 * x * x * x)))


def _softmax_lastdim(s):
    m = jnp.max(s, axis=-1, keepdims=True)
    e = jnp.exp(s - m)
    return e * pl.reciprocal(jnp.sum(e, axis=-1, keepdims=True), approx=True)


# ---- the single fused Pallas kernel ------------------------------------------
def bert_kernel(x_ref, pe_ref, bias_ref,
                g1_ref, be1_ref, wqkv_ref, wo_ref, bo_ref,
                g2_ref, be2_ref, w1_ref, b1_ref, w2_ref, b2_ref,
                gf_ref, bf_ref, o_ref):
    # x: (B*S, D) f32 — batch*seq on sublanes, D on lanes.  PE add fused here.
    x = x_ref[...] + pe_ref[...]
    # additive key-mask bias, hoisted out of the layer loop: (B, 1, S)
    bias3 = bias_ref[...][:, None, :]

    # static layer loop (N_LAYERS = 2).
    # TODO(synk): switch to lax.fori_loop over the stacked-weight axis if
    # N_LAYERS grows beyond a handful (bounded live ranges / code size).
    for l in range(N_LAYERS):
        # --- attention sublayer:  x = x + proj(MHSA(LN(x))) -------------------
        xn = _layernorm(x, g1_ref[l], be1_ref[l])                    # (B*S, D) f32
        # fused QKV: one (16,32)@(32,96) bf16 MXU matmul, f32 accumulation.
        qkv = jnp.dot(xn.astype(jnp.bfloat16), wqkv_ref[l],
                      preferred_element_type=jnp.float32)            # (B*S, 3D) f32
        qkv = qkv.reshape(B, S, 3 * D).astype(jnp.bfloat16)          # (B, S, 3D) bf16

        attn = jnp.zeros((B * S, D), jnp.float32)
        for h in range(H):                                           # static, H = 4
            q = qkv[:, :, h * HD:(h + 1) * HD]                       # (B, S, HD)
            k = qkv[:, :, D + h * HD:D + (h + 1) * HD]               # (B, S, HD)
            v = qkv[:, :, 2 * D + h * HD:2 * D + (h + 1) * HD]       # (B, S, HD)
            # 1/sqrt(HD) already folded into the Q columns of wqkv.
            sc = jax.lax.dot_general(q, k, _BMM_T,
                                     preferred_element_type=jnp.float32)  # (B,S,S)
            p = _softmax_lastdim(sc + bias3)                          # f32
            ctx = jax.lax.dot_general(p.astype(jnp.bfloat16), v, _BMM,
                                      preferred_element_type=jnp.float32)  # (B,S,HD)
            # sum over heads of per-head output projections == proj(concat(heads))
            ctx2 = ctx.reshape(B * S, HD).astype(jnp.bfloat16)        # (B*S, HD)
            attn = attn + jnp.dot(ctx2, wo_ref[l, h],
                                  preferred_element_type=jnp.float32)  # (B*S, D)
        x = x + attn + bo_ref[l]                                      # dropout1 = id

        # --- FFN sublayer:  x = x + W2(gelu(W1(LN(x)))) ------------------------
        xn2 = _layernorm(x, g2_ref[l], be2_ref[l])
        hid = _gelu(jnp.dot(xn2.astype(jnp.bfloat16), w1_ref[l],
                            preferred_element_type=jnp.float32) + b1_ref[l])
        x = x + jnp.dot(hid.astype(jnp.bfloat16), w2_ref[l],
                        preferred_element_type=jnp.float32) + b2_ref[l]

    # --- final LayerNorm fused into the same kernel ----------------------------
    o_ref[...] = _layernorm(x, gf_ref[...], bf_ref[...])


# ---- positional encoding: precomputed ONCE as a module-level constant ---------
def _positional_encoding(max_len, d):
    pos = jnp.arange(max_len, dtype=jnp.float32)[:, None]
    div = jnp.exp(jnp.arange(0, d, 2, dtype=jnp.float32) * (-math.log(10000.0) / d))
    pe = jnp.zeros((max_len, d), jnp.float32)
    pe = pe.at[:, 0::2].set(jnp.sin(pos * div))
    pe = pe.at[:, 1::2].set(jnp.cos(pos * div))
    return pe


_PE_TILED = jnp.tile(_positional_encoding(S, D), (B, 1))   # (B*S, D), hoisted


# ---- wrapper -------------------------------------------------------------------
@jax.jit
def bert_forward(tokens, src_mask, emb_table_scaled, params):
    b, s = tokens.shape
    # glue (plain JAX): data-dependent embedding gather stays outside the kernel.
    # sqrt(D) is already folded into emb_table_scaled (done once, not per call).
    x = emb_table_scaled[tokens].reshape(b * s, D)
    # additive key mask, 2-D: 0 = keep, -1e9 = masked (finite -> no NaN softmax)
    bias = (src_mask.reshape(b, s).astype(jnp.float32) - 1.0) * 1e9   # (B, S)

    out = pl.pallas_call(
        bert_kernel,
        out_shape=jax.ShapeDtypeStruct((b * s, D), jnp.float32),
    )(x, _PE_TILED, bias,
      params["g1"], params["be1"], params["wqkv"], params["wo"], params["bo"],
      params["g2"], params["be2"], params["w1"], params["b1"],
      params["w2"], params["b2"], params["gf"], params["bf"])
    return out.reshape(b, s, D)


# ---- pure-JAX f32 reference (same packed params) for self-check ----------------
def bert_reference(tokens, src_mask, emb_table_scaled, params):
    x = emb_table_scaled[tokens].reshape(B * S, D).astype(jnp.float32)
    x = x + _PE_TILED
    bias = (src_mask.reshape(B, S).astype(jnp.float32) - 1.0) * 1e9
    wqkv = params["wqkv"].astype(jnp.float32)
    wo = params["wo"].astype(jnp.float32)
    w1 = params["w1"].astype(jnp.float32)
    w2 = params["w2"].astype(jnp.float32)
    for l in range(N_LAYERS):
        xn = _layernorm(x, params["g1"][l], params["be1"][l])
        qkv = (xn @ wqkv[l]).reshape(B, S, 3 * D)
        attn = jnp.zeros((B * S, D), jnp.float32)
        for h in range(H):
            q = qkv[:, :, h * HD:(h + 1) * HD]
            k = qkv[:, :, D + h * HD:D + (h + 1) * HD]
            v = qkv[:, :, 2 * D + h * HD:2 * D + (h + 1) * HD]
            sc = jnp.einsum("bqd,bkd->bqk", q, k) + bias[:, None, :]
            p = jax.nn.softmax(sc, axis=-1)
            ctx = jnp.einsum("bqk,bkd->bqd", p, v).reshape(B * S, HD)
            attn = attn + ctx @ wo[l, h]
        x = x + attn + params["bo"][l]
        xn2 = _layernorm(x, params["g2"][l], params["be2"][l])
        hid = jax.nn.gelu(xn2 @ w1[l] + params["b1"][l])   # tanh approx (default)
        x = x + hid @ w2[l] + params["b2"][l]
    return _layernorm(x, params["gf"], params["bf"]).reshape(B, S, D)


# ---- parameter init -------------------------------------------------------------
def _init_linear(key, fan_in, fan_out):
    kw, kb = jax.random.split(key)
    bound = 1.0 / math.sqrt(fan_in)
    w = jax.random.uniform(kw, (fan_in, fan_out), jnp.float32, -bound, bound)
    b = jax.random.uniform(kb, (1, fan_out), jnp.float32, -bound, bound)
    return w, b


def init_params(key):
    names = ("g1", "be1", "wqkv", "wo", "bo", "g2", "be2", "w1", "b1", "w2", "b2")
    per = {k: [] for k in names}
    q_scale = 1.0 / math.sqrt(HD)          # attention scale folded into Wq
    for lk in jax.random.split(key, N_LAYERS):
        ks = jax.random.split(lk, 6)
        bound = 1.0 / math.sqrt(D)
        wq = jax.random.uniform(ks[0], (D, D), jnp.float32, -bound, bound)
        wk = jax.random.uniform(ks[1], (D, D), jnp.float32, -bound, bound)
        wv = jax.random.uniform(ks[2], (D, D), jnp.float32, -bound, bound)
        wo, bo = _init_linear(ks[3], D, D)
        w1, b1 = _init_linear(ks[4], D, MLP)
        w2, b2 = _init_linear(ks[5], MLP, D)
        per["g1"].append(jnp.ones((1, D), jnp.float32))
        per["be1"].append(jnp.zeros((1, D), jnp.float32))
        # fused QKV in (in, out) layout; output columns grouped [Q | K | V],
        # each D-wide section head-split along the column axis (h*HD + d).
        per["wqkv"].append(jnp.concatenate([wq * q_scale, wk, wv], axis=1))  # (D, 3D)
        per["wo"].append(wo.reshape(H, HD, D))                               # (H, HD, D)
        per["bo"].append(bo)
        per["g2"].append(jnp.ones((1, D), jnp.float32))
        per["be2"].append(jnp.zeros((1, D), jnp.float32))
        per["w1"].append(w1); per["b1"].append(b1)
        per["w2"].append(w2); per["b2"].append(b2)
    params = {k: jnp.stack(v) for k, v in per.items()}   # leading (N_LAYERS, ...)
    # bf16 storage for all MXU weight operands; biases / LN params stay f32.
    for k in ("wqkv", "wo", "w1", "w2"):
        params[k] = params[k].astype(jnp.bfloat16)
    params["gf"] = jnp.ones((1, D), jnp.float32)
    params["bf"] = jnp.zeros((1, D), jnp.float32)
    return params


if __name__ == "__main__":
    key = jax.random.PRNGKey(0)
    k_tok, k_emb, k_layers = jax.random.split(key, 3)

    tokens = jax.random.randint(k_tok, (B, S), 0, VOCAB)             # token ids
    # mask out the last key position for every sequence (1 = keep, 0 = mask)
    src_mask = jnp.ones((B, 1, S), jnp.int32).at[:, :, -1].set(0)
    emb_table = jax.random.normal(k_emb, (VOCAB, D), jnp.float32)    # nn.Embedding
    emb_scaled = emb_table * math.sqrt(D)   # sqrt(D) folded into the table once
    params = init_params(k_layers)

    out = jax.block_until_ready(bert_forward(tokens, src_mask, emb_scaled, params))
    assert out.shape == (B, S, D)
    assert bool(jnp.all(jnp.isfinite(out)))

    ref = bert_reference(tokens, src_mask, emb_scaled, params)
    assert float(jnp.max(jnp.abs(out - ref))) < 0.15   # bf16/approx tolerance
    print("KERNEL_OK")
</pallas_src>

<mosaic_0001>
module attributes {stable_mosaic.version = 11 : i64} {
  func.func @bert_kernel(%arg0: memref<16x32xf32, #tpu.memory_space<vmem>>, %arg1: memref<16x32xf32, #tpu.memory_space<vmem>>, %arg2: memref<2x8xf32, #tpu.memory_space<vmem>>, %arg3: memref<2x1x32xf32, #tpu.memory_space<vmem>>, %arg4: memref<2x1x32xf32, #tpu.memory_space<vmem>>, %arg5: memref<2x32x96xbf16, #tpu.memory_space<vmem>>, %arg6: memref<2x4x8x32xbf16, #tpu.memory_space<vmem>>, %arg7: memref<2x1x32xf32, #tpu.memory_space<vmem>>, %arg8: memref<2x1x32xf32, #tpu.memory_space<vmem>>, %arg9: memref<2x1x32xf32, #tpu.memory_space<vmem>>, %arg10: memref<2x32x64xbf16, #tpu.memory_space<vmem>>, %arg11: memref<2x1x64xf32, #tpu.memory_space<vmem>>, %arg12: memref<2x64x32xbf16, #tpu.memory_space<vmem>>, %arg13: memref<2x1x32xf32, #tpu.memory_space<vmem>>, %arg14: memref<1x32xf32, #tpu.memory_space<vmem>>, %arg15: memref<1x32xf32, #tpu.memory_space<vmem>>, %arg16: memref<16x32xf32, #tpu.memory_space<vmem>>) attributes {dimension_semantics = [], scalar_prefetch = 0 : i64, scratch_operands = 0 : i64, tpu.core_type = #tpu.core_type<tc>} {
    %c0 = arith.constant 0 : index
    %c0_0 = arith.constant 0 : index
    %0 = vector.load %arg0[%c0, %c0_0] : memref<16x32xf32, #tpu.memory_space<vmem>>, vector<16x32xf32>
    %c0_1 = arith.constant 0 : index
    %c0_2 = arith.constant 0 : index
    %1 = vector.load %arg1[%c0_1, %c0_2] : memref<16x32xf32, #tpu.memory_space<vmem>>, vector<16x32xf32>
    %2 = arith.addf %0, %1 : vector<16x32xf32>
    %c0_3 = arith.constant 0 : index
    %c0_4 = arith.constant 0 : index
    %3 = vector.load %arg2[%c0_3, %c0_4] : memref<2x8xf32, #tpu.memory_space<vmem>>, vector<2x8xf32>
    %4 = vector.shape_cast %3 : vector<2x8xf32> to vector<2x1x8xf32>
    %c0_5 = arith.constant 0 : index
    %c0_6 = arith.constant 0 : index
    %c0_7 = arith.constant 0 : index
    %5 = vector.load %arg3[%c0_5, %c0_6, %c0_7] : memref<2x1x32xf32, #tpu.memory_space<vmem>>, vector<1x1x32xf32>
    %6 = vector.shape_cast %5 : vector<1x1x32xf32> to vector<1x32xf32>
    %c0_8 = arith.constant 0 : index
    %c0_9 = arith.constant 0 : index
    %c0_10 = arith.constant 0 : index
    %7 = vector.load %arg4[%c0_8, %c0_9, %c0_10] : memref<2x1x32xf32, #tpu.memory_space<vmem>>, vector<1x1x32xf32>
    %8 = vector.shape_cast %7 : vector<1x1x32xf32> to vector<1x32xf32>
    %cst = arith.constant dense<0.000000e+00> : vector<16xf32>
    %9 = vector.multi_reduction <add>, %2, %cst [1] : vector<16x32xf32> to vector<16xf32>
    %10 = vector.shape_cast %9 : vector<16xf32> to vector<16x1xf32>
    %cst_11 = arith.constant 3.200000e+01 : f32
    %11 = vector.broadcast %cst_11 : f32 to vector<16x1xf32>
    %12 = arith.divf %10, %11 : vector<16x1xf32>
    %13 = vector.broadcast %12 : vector<16x1xf32> to vector<16x32xf32>
    %14 = arith.subf %2, %13 : vector<16x32xf32>
    %15 = arith.mulf %14, %14 : vector<16x32xf32>
    %cst_12 = arith.constant dense<0.000000e+00> : vector<16xf32>
    %16 = vector.multi_reduction <add>, %15, %cst_12 [1] : vector<16x32xf32> to vector<16xf32>
    %17 = vector.shape_cast %16 : vector<16xf32> to vector<16x1xf32>
    %cst_13 = arith.constant 3.200000e+01 : f32
    %18 = vector.broadcast %cst_13 : f32 to vector<16x1xf32>
    %19 = arith.divf %17, %18 : vector<16x1xf32>
    %20 = vector.broadcast %12 : vector<16x1xf32> to vector<16x32xf32>
    %21 = arith.subf %2, %20 : vector<16x32xf32>
    %cst_14 = arith.constant 9.99999974E-6 : f32
    %22 = vector.broadcast %cst_14 : f32 to vector<16x1xf32>
    %23 = arith.addf %19, %22 : vector<16x1xf32>
    %24 = math.rsqrt %23 : vector<16x1xf32>
    %25 = vector.broadcast %24 : vector<16x1xf32> to vector<16x32xf32>
    %26 = arith.mulf %21, %25 : vector<16x32xf32>
    %27 = vector.broadcast %6 : vector<1x32xf32> to vector<16x32xf32>
    %28 = arith.mulf %26, %27 : vector<16x32xf32>
    %29 = vector.broadcast %8 : vector<1x32xf32> to vector<16x32xf32>
    %30 = arith.addf %28, %29 : vector<16x32xf32>
    %31 = arith.truncf %30 : vector<16x32xf32> to vector<16x32xbf16>
    %c0_15 = arith.constant 0 : index
    %c0_16 = arith.constant 0 : index
    %c0_17 = arith.constant 0 : index
    %32 = vector.load %arg5[%c0_15, %c0_16, %c0_17] : memref<2x32x96xbf16, #tpu.memory_space<vmem>>, vector<1x32x96xbf16>
    %33 = vector.shape_cast %32 : vector<1x32x96xbf16> to vector<32x96xbf16>
    %cst_18 = arith.constant dense<0.000000e+00> : vector<16x96xf32>
    %34 = tpu.matmul %31, %33, %cst_18 {dimension_numbers = #tpu.dot_dimension_numbers<[1], [0], [0], [1], [0, 0, 1, 1], [], []>} : vector<16x32xbf16>, vector<32x96xbf16>, vector<16x96xf32> -> vector<16x96xf32>
    %35 = vector.shape_cast %34 : vector<16x96xf32> to vector<2x8x96xf32>
    %36 = arith.truncf %35 : vector<2x8x96xf32> to vector<2x8x96xbf16>
    %cst_19 = arith.constant 0.000000e+00 : f32
    %37 = vector.broadcast %cst_19 : f32 to vector<16x32xf32>
    %38 = vector.extract_strided_slice %36 {offsets = [0, 0, 0], sizes = [2, 8, 8], strides = [1, 1, 1]} : vector<2x8x96xbf16> to vector<2x8x8xbf16>
    %39 = vector.extract_strided_slice %36 {offsets = [0, 0, 32], sizes = [2, 8, 8], strides = [1, 1, 1]} : vector<2x8x96xbf16> to vector<2x8x8xbf16>
    %40 = vector.extract_strided_slice %36 {offsets = [0, 0, 64], sizes = [2, 8, 8], strides = [1, 1, 1]} : vector<2x8x96xbf16> to vector<2x8x8xbf16>
    %cst_20 = arith.constant dense<0.000000e+00> : vector<2x8x8xf32>
    %41 = tpu.matmul %38, %39, %cst_20 {dimension_numbers = #tpu.dot_dimension_numbers<[2], [2], [1], [1], [0, 0, 0, 1, 1, 1], [0], [0]>} : vector<2x8x8xbf16>, vector<2x8x8xbf16>, vector<2x8x8xf32> -> vector<2x8x8xf32>
    %42 = vector.broadcast %4 : vector<2x1x8xf32> to vector<2x8x8xf32>
    %43 = arith.addf %41, %42 : vector<2x8x8xf32>
    %cst_21 = arith.constant dense<0xFF800000> : vector<2x8xf32>
    %44 = vector.multi_reduction <maximumf>, %43, %cst_21 [2] : vector<2x8x8xf32> to vector<2x8xf32>
    %45 = vector.shape_cast %44 : vector<2x8xf32> to vector<2x8x1xf32>
    %46 = vector.broadcast %45 : vector<2x8x1xf32> to vector<2x8x8xf32>
    %47 = arith.subf %43, %46 : vector<2x8x8xf32>
    %48 = math.exp %47 : vector<2x8x8xf32>
    %cst_22 = arith.constant dense<0.000000e+00> : vector<2x8xf32>
    %49 = vector.multi_reduction <add>, %48, %cst_22 [2] : vector<2x8x8xf32> to vector<2x8xf32>
    %50 = vector.shape_cast %49 : vector<2x8xf32> to vector<2x8x1xf32>
    %51 = tpu.reciprocal %50 {approx = true} : vector<2x8x1xf32> -> vector<2x8x1xf32>
    %52 = vector.broadcast %51 : vector<2x8x1xf32> to vector<2x8x8xf32>
    %53 = arith.mulf %48, %52 : vector<2x8x8xf32>
    %54 = arith.truncf %53 : vector<2x8x8xf32> to vector<2x8x8xbf16>
    %cst_23 = arith.constant dense<0.000000e+00> : vector<2x8x8xf32>
    %55 = tpu.matmul %54, %40, %cst_23 {dimension_numbers = #tpu.dot_dimension_numbers<[2], [1], [1], [2], [0, 0, 0, 1, 1, 2], [0], [0]>} : vector<2x8x8xbf16>, vector<2x8x8xbf16>, vector<2x8x8xf32> -> vector<2x8x8xf32>
    %56 = vector.shape_cast %55 : vector<2x8x8xf32> to vector<16x8xf32>
    %57 = arith.truncf %56 : vector<16x8xf32> to vector<16x8xbf16>
    %c0_24 = arith.constant 0 : index
    %c0_25 = arith.constant 0 : index
    %c0_26 = arith.constant 0 : index
    %c0_27 = arith.constant 0 : index
    %58 = vector.load %arg6[%c0_24, %c0_25, %c0_26, %c0_27] : memref<2x4x8x32xbf16, #tpu.memory_space<vmem>>, vector<1x1x8x32xbf16>
    %59 = vector.shape_cast %58 : vector<1x1x8x32xbf16> to vector<8x32xbf16>
    %cst_28 = arith.constant dense<0.000000e+00> : vector<16x32xf32>
    %60 = tpu.matmul %57, %59, %cst_28 {dimension_numbers = #tpu.dot_dimension_numbers<[1], [0], [0], [1], [0, 0, 1, 1], [], []>} : vector<16x8xbf16>, vector<8x32xbf16>, vector<16x32xf32> -> vector<16x32xf32>
    %61 = arith.addf %37, %60 : vector<16x32xf32>
    %62 = vector.extract_strided_slice %36 {offsets = [0, 0, 8], sizes = [2, 8, 8], strides = [1, 1, 1]} : vector<2x8x96xbf16> to vector<2x8x8xbf16>
    %63 = vector.extract_strided_slice %36 {offsets = [0, 0, 40], sizes = [2, 8, 8], strides = [1, 1, 1]} : vector<2x8x96xbf16> to vector<2x8x8xbf16>
    %64 = vector.extract_strided_slice %36 {offsets = [0, 0, 72], sizes = [2, 8, 8], strides = [1, 1, 1]} : vector<2x8x96xbf16> to vector<2x8x8xbf16>
    %cst_29 = arith.constant dense<0.000000e+00> : vector<2x8x8xf32>
    %65 = tpu.matmul %62, %63, %cst_29 {dimension_numbers = #tpu.dot_dimension_numbers<[2], [2], [1], [1], [0, 0, 0, 1, 1, 1], [0], [0]>} : vector<2x8x8xbf16>, vector<2x8x8xbf16>, vector<2x8x8xf32> -> vector<2x8x8xf32>
    %66 = vector.broadcast %4 : vector<2x1x8xf32> to vector<2x8x8xf32>
    %67 = arith.addf %65, %66 : vector<2x8x8xf32>
    %cst_30 = arith.constant dense<0xFF800000> : vector<2x8xf32>
    %68 = vector.multi_reduction <maximumf>, %67, %cst_30 [2] : vector<2x8x8xf32> to vector<2x8xf32>
    %69 = vector.shape_cast %68 : vector<2x8xf32> to vector<2x8x1xf32>
    %70 = vector.broadcast %69 : vector<2x8x1xf32> to vector<2x8x8xf32>
    %71 = arith.subf %67, %70 : vector<2x8x8xf32>
    %72 = math.exp %71 : vector<2x8x8xf32>
    %cst_31 = arith.constant dense<0.000000e+00> : vector<2x8xf32>
    %73 = vector.multi_reduction <add>, %72, %cst_31 [2] : vector<2x8x8xf32> to vector<2x8xf32>
    %74 = vector.shape_cast %73 : vector<2x8xf32> to vector<2x8x1xf32>
    %75 = tpu.reciprocal %74 {approx = true} : vector<2x8x1xf32> -> vector<2x8x1xf32>
    %76 = vector.broadcast %75 : vector<2x8x1xf32> to vector<2x8x8xf32>
    %77 = arith.mulf %72, %76 : vector<2x8x8xf32>
    %78 = arith.truncf %77 : vector<2x8x8xf32> to vector<2x8x8xbf16>
    %cst_32 = arith.constant dense<0.000000e+00> : vector<2x8x8xf32>
    %79 = tpu.matmul %78, %64, %cst_32 {dimension_numbers = #tpu.dot_dimension_numbers<[2], [1], [1], [2], [0, 0, 0, 1, 1, 2], [0], [0]>} : vector<2x8x8xbf16>, vector<2x8x8xbf16>, vector<2x8x8xf32> -> vector<2x8x8xf32>
    %80 = vector.shape_cast %79 : vector<2x8x8xf32> to vector<16x8xf32>
    %81 = arith.truncf %80 : vector<16x8xf32> to vector<16x8xbf16>
    %c0_33 = arith.constant 0 : index
    %c1 = arith.constant 1 : index
    %c0_34 = arith.constant 0 : index
    %c0_35 = arith.constant 0 : index
    %82 = vector.load %arg6[%c0_33, %c1, %c0_34, %c0_35] : memref<2x4x8x32xbf16, #tpu.memory_space<vmem>>, vector<1x1x8x32xbf16>
    %83 = vector.shape_cast %82 : vector<1x1x8x32xbf16> to vector<8x32xbf16>
    %cst_36 = arith.constant dense<0.000000e+00> : vector<16x32xf32>
    %84 = tpu.matmul %81, %83, %cst_36 {dimension_numbers = #tpu.dot_dimension_numbers<[1], [0], [0], [1], [0, 0, 1, 1], [], []>} : vector<16x8xbf16>, vector<8x32xbf16>, vector<16x32xf32> -> vector<16x32xf32>
    %85 = arith.addf %61, %84 : vector<16x32xf32>
    %86 = vector.extract_strided_slice %36 {offsets = [0, 0, 16], sizes = [2, 8, 8], strides = [1, 1, 1]} : vector<2x8x96xbf16> to vector<2x8x8xbf16>
    %87 = vector.extract_strided_slice %36 {offsets = [0, 0, 48], sizes = [2, 8, 8], strides = [1, 1, 1]} : vector<2x8x96xbf16> to vector<2x8x8xbf16>
    %88 = vector.extract_strided_slice %36 {offsets = [0, 0, 80], sizes = [2, 8, 8], strides = [1, 1, 1]} : vector<2x8x96xbf16> to vector<2x8x8xbf16>
    %cst_37 = arith.constant dense<0.000000e+00> : vector<2x8x8xf32>
    %89 = tpu.matmul %86, %87, %cst_37 {dimension_numbers = #tpu.dot_dimension_numbers<[2], [2], [1], [1], [0, 0, 0, 1, 1, 1], [0], [0]>} : vector<2x8x8xbf16>, vector<2x8x8xbf16>, vector<2x8x8xf32> -> vector<2x8x8xf32>
    %90 = vector.broadcast %4 : vector<2x1x8xf32> to vector<2x8x8xf32>
    %91 = arith.addf %89, %90 : vector<2x8x8xf32>
    %cst_38 = arith.constant dense<0xFF800000> : vector<2x8xf32>
    %92 = vector.multi_reduction <maximumf>, %91, %cst_38 [2] : vector<2x8x8xf32> to vector<2x8xf32>
    %93 = vector.shape_cast %92 : vector<2x8xf32> to vector<2x8x1xf32>
    %94 = vector.broadcast %93 : vector<2x8x1xf32> to vector<2x8x8xf32>
    %95 = arith.subf %91, %94 : vector<2x8x8xf32>
    %96 = math.exp %95 : vector<2x8x8xf32>
    %cst_39 = arith.constant dense<0.000000e+00> : vector<2x8xf32>
    %97 = vector.multi_reduction <add>, %96, %cst_39 [2] : vector<2x8x8xf32> to vector<2x8xf32>
    %98 = vector.shape_cast %97 : vector<2x8xf32> to vector<2x8x1xf32>
    %99 = tpu.reciprocal %98 {approx = true} : vector<2x8x1xf32> -> vector<2x8x1xf32>
    %100 = vector.broadcast %99 : vector<2x8x1xf32> to vector<2x8x8xf32>
    %101 = arith.mulf %96, %100 : vector<2x8x8xf32>
    %102 = arith.truncf %101 : vector<2x8x8xf32> to vector<2x8x8xbf16>
    %cst_40 = arith.constant dense<0.000000e+00> : vector<2x8x8xf32>
    %103 = tpu.matmul %102, %88, %cst_40 {dimension_numbers = #tpu.dot_dimension_numbers<[2], [1], [1], [2], [0, 0, 0, 1, 1, 2], [0], [0]>} : vector<2x8x8xbf16>, vector<2x8x8xbf16>, vector<2x8x8xf32> -> vector<2x8x8xf32>
    %104 = vector.shape_cast %103 : vector<2x8x8xf32> to vector<16x8xf32>
    %105 = arith.truncf %104 : vector<16x8xf32> to vector<16x8xbf16>
    %c0_41 = arith.constant 0 : index
    %c2 = arith.constant 2 : index
    %c0_42 = arith.constant 0 : index
    %c0_43 = arith.constant 0 : index
    %106 = vector.load %arg6[%c0_41, %c2, %c0_42, %c0_43] : memref<2x4x8x32xbf16, #tpu.memory_space<vmem>>, vector<1x1x8x32xbf16>
    %107 = vector.shape_cast %106 : vector<1x1x8x32xbf16> to vector<8x32xbf16>
    %cst_44 = arith.constant dense<0.000000e+00> : vector<16x32xf32>
    %108 = tpu.matmul %105, %107, %cst_44 {dimension_numbers = #tpu.dot_dimension_numbers<[1], [0], [0], [1], [0, 0, 1, 1], [], []>} : vector<16x8xbf16>, vector<8x32xbf16>, vector<16x32xf32> -> vector<16x32xf32>
    %109 = arith.addf %85, %108 : vector<16x32xf32>
    %110 = vector.extract_strided_slice %36 {offsets = [0, 0, 24], sizes = [2, 8, 8], strides = [1, 1, 1]} : vector<2x8x96xbf16> to vector<2x8x8xbf16>
    %111 = vector.extract_strided_slice %36 {offsets = [0, 0, 56], sizes = [2, 8, 8], strides = [1, 1, 1]} : vector<2x8x96xbf16> to vector<2x8x8xbf16>
    %112 = vector.extract_strided_slice %36 {offsets = [0, 0, 88], sizes = [2, 8, 8], strides = [1, 1, 1]} : vector<2x8x96xbf16> to vector<2x8x8xbf16>
    %cst_45 = arith.constant dense<0.000000e+00> : vector<2x8x8xf32>
    %113 = tpu.matmul %110, %111, %cst_45 {dimension_numbers = #tpu.dot_dimension_numbers<[2], [2], [1], [1], [0, 0, 0, 1, 1, 1], [0], [0]>} : vector<2x8x8xbf16>, vector<2x8x8xbf16>, vector<2x8x8xf32> -> vector<2x8x8xf32>
    %114 = vector.broadcast %4 : vector<2x1x8xf32> to vector<2x8x8xf32>
    %115 = arith.addf %113, %114 : vector<2x8x8xf32>
    %cst_46 = arith.constant dense<0xFF800000> : vector<2x8xf32>
    %116 = vector.multi_reduction <maximumf>, %115, %cst_46 [2] : vector<2x8x8xf32> to vector<2x8xf32>
    %117 = vector.shape_cast %116 : vector<2x8xf32> to vector<2x8x1xf32>
    %118 = vector.broadcast %117 : vector<2x8x1xf32> to vector<2x8x8xf32>
    %119 = arith.subf %115, %118 : vector<2x8x8xf32>
    %120 = math.exp %119 : vector<2x8x8xf32>
    %cst_47 = arith.constant dense<0.000000e+00> : vector<2x8xf32>
    %121 = vector.multi_reduction <add>, %120, %cst_47 [2] : vector<2x8x8xf32> to vector<2x8xf32>
    %122 = vector.shape_cast %121 : vector<2x8xf32> to vector<2x8x1xf32>
    %123 = tpu.reciprocal %122 {approx = true} : vector<2x8x1xf32> -> vector<2x8x1xf32>
    %124 = vector.broadcast %123 : vector<2x8x1xf32> to vector<2x8x8xf32>
    %125 = arith.mulf %120, %124 : vector<2x8x8xf32>
    %126 = arith.truncf %125 : vector<2x8x8xf32> to vector<2x8x8xbf16>
    %cst_48 = arith.constant dense<0.000000e+00> : vector<2x8x8xf32>
    %127 = tpu.matmul %126, %112, %cst_48 {dimension_numbers = #tpu.dot_dimension_numbers<[2], [1], [1], [2], [0, 0, 0, 1, 1, 2], [0], [0]>} : vector<2x8x8xbf16>, vector<2x8x8xbf16>, vector<2x8x8xf32> -> vector<2x8x8xf32>
    %128 = vector.shape_cast %127 : vector<2x8x8xf32> to vector<16x8xf32>
    %129 = arith.truncf %128 : vector<16x8xf32> to vector<16x8xbf16>
    %c0_49 = arith.constant 0 : index
    %c3 = arith.constant 3 : index
    %c0_50 = arith.constant 0 : index
    %c0_51 = arith.constant 0 : index
    %130 = vector.load %arg6[%c0_49, %c3, %c0_50, %c0_51] : memref<2x4x8x32xbf16, #tpu.memory_space<vmem>>, vector<1x1x8x32xbf16>
    %131 = vector.shape_cast %130 : vector<1x1x8x32xbf16> to vector<8x32xbf16>
    %cst_52 = arith.constant dense<0.000000e+00> : vector<16x32xf32>
    %132 = tpu.matmul %129, %131, %cst_52 {dimension_numbers = #tpu.dot_dimension_numbers<[1], [0], [0], [1], [0, 0, 1, 1], [], []>} : vector<16x8xbf16>, vector<8x32xbf16>, vector<16x32xf32> -> vector<16x32xf32>
    %133 = arith.addf %109, %132 : vector<16x32xf32>
    %134 = arith.addf %2, %133 : vector<16x32xf32>
    %c0_53 = arith.constant 0 : index
    %c0_54 = arith.constant 0 : index
    %c0_55 = arith.constant 0 : index
    %135 = vector.load %arg7[%c0_53, %c0_54, %c0_55] : memref<2x1x32xf32, #tpu.memory_space<vmem>>, vector<1x1x32xf32>
    %136 = vector.shape_cast %135 : vector<1x1x32xf32> to vector<1x32xf32>
    %137 = vector.broadcast %136 : vector<1x32xf32> to vector<16x32xf32>
    %138 = arith.addf %134, %137 : vector<16x32xf32>
    %c0_56 = arith.constant 0 : index
    %c0_57 = arith.constant 0 : index
    %c0_58 = arith.constant 0 : index
    %139 = vector.load %arg8[%c0_56, %c0_57, %c0_58] : memref<2x1x32xf32, #tpu.memory_space<vmem>>, vector<1x1x32xf32>
    %140 = vector.shape_cast %139 : vector<1x1x32xf32> to vector<1x32xf32>
    %c0_59 = arith.constant 0 : index
    %c0_60 = arith.constant 0 : index
    %c0_61 = arith.constant 0 : index
    %141 = vector.load %arg9[%c0_59, %c0_60, %c0_61] : memref<2x1x32xf32, #tpu.memory_space<vmem>>, vector<1x1x32xf32>
    %142 = vector.shape_cast %141 : vector<1x1x32xf32> to vector<1x32xf32>
    %cst_62 = arith.constant dense<0.000000e+00> : vector<16xf32>
    %143 = vector.multi_reduction <add>, %138, %cst_62 [1] : vector<16x32xf32> to vector<16xf32>
    %144 = vector.shape_cast %143 : vector<16xf32> to vector<16x1xf32>
    %cst_63 = arith.constant 3.200000e+01 : f32
    %145 = vector.broadcast %cst_63 : f32 to vector<16x1xf32>
    %146 = arith.divf %144, %145 : vector<16x1xf32>
    %147 = vector.broadcast %146 : vector<16x1xf32> to vector<16x32xf32>
    %148 = arith.subf %138, %147 : vector<16x32xf32>
    %149 = arith.mulf %148, %148 : vector<16x32xf32>
    %cst_64 = arith.constant dense<0.000000e+00> : vector<16xf32>
    %150 = vector.multi_reduction <add>, %149, %cst_64 [1] : vector<16x32xf32> to vector<16xf32>
    %151 = vector.shape_cast %150 : vector<16xf32> to vector<16x1xf32>
    %cst_65 = arith.constant 3.200000e+01 : f32
    %152 = vector.broadcast %cst_65 : f32 to vector<16x1xf32>
    %153 = arith.divf %151, %152 : vector<16x1xf32>
    %154 = vector.broadcast %146 : vector<16x1xf32> to vector<16x32xf32>
    %155 = arith.subf %138, %154 : vector<16x32xf32>
    %cst_66 = arith.constant 9.99999974E-6 : f32
    %156 = vector.broadcast %cst_66 : f32 to vector<16x1xf32>
    %157 = arith.addf %153, %156 : vector<16x1xf32>
    %158 = math.rsqrt %157 : vector<16x1xf32>
    %159 = vector.broadcast %158 : vector<16x1xf32> to vector<16x32xf32>
    %160 = arith.mulf %155, %159 : vector<16x32xf32>
    %161 = vector.broadcast %140 : vector<1x32xf32> to vector<16x32xf32>
    %162 = arith.mulf %160, %161 : vector<16x32xf32>
    %163 = vector.broadcast %142 : vector<1x32xf32> to vector<16x32xf32>
    %164 = arith.addf %162, %163 : vector<16x32xf32>
    %165 = arith.truncf %164 : vector<16x32xf32> to vector<16x32xbf16>
    %c0_67 = arith.constant 0 : index
    %c0_68 = arith.constant 0 : index
    %c0_69 = arith.constant 0 : index
    %166 = vector.load %arg10[%c0_67, %c0_68, %c0_69] : memref<2x32x64xbf16, #tpu.memory_space<vmem>>, vector<1x32x64xbf16>
    %167 = vector.shape_cast %166 : vector<1x32x64xbf16> to vector<32x64xbf16>
    %cst_70 = arith.constant dense<0.000000e+00> : vector<16x64xf32>
    %168 = tpu.matmul %165, %167, %cst_70 {dimension_numbers = #tpu.dot_dimension_numbers<[1], [0], [0], [1], [0, 0, 1, 1], [], []>} : vector<16x32xbf16>, vector<32x64xbf16>, vector<16x64xf32> -> vector<16x64xf32>
    %c0_71 = arith.constant 0 : index
    %c0_72 = arith.constant 0 : index
    %c0_73 = arith.constant 0 : index
    %169 = vector.load %arg11[%c0_71, %c0_72, %c0_73] : memref<2x1x64xf32, #tpu.memory_space<vmem>>, vector<1x1x64xf32>
    %170 = vector.shape_cast %169 : vector<1x1x64xf32> to vector<1x64xf32>
    %171 = vector.broadcast %170 : vector<1x64xf32> to vector<16x64xf32>
    %172 = arith.addf %168, %171 : vector<16x64xf32>
    %cst_74 = arith.constant 5.000000e-01 : f32
    %173 = vector.broadcast %cst_74 : f32 to vector<16x64xf32>
    %174 = arith.mulf %173, %172 : vector<16x64xf32>
    %cst_75 = arith.constant 4.471500e-02 : f32
    %175 = vector.broadcast %cst_75 : f32 to vector<16x64xf32>
    %176 = arith.mulf %175, %172 : vector<16x64xf32>
    %177 = arith.mulf %176, %172 : vector<16x64xf32>
    %178 = arith.mulf %177, %172 : vector<16x64xf32>
    %179 = arith.addf %172, %178 : vector<16x64xf32>
    %cst_76 = arith.constant 0.797884583 : f32
    %180 = vector.broadcast %cst_76 : f32 to vector<16x64xf32>
    %181 = arith.mulf %180, %179 : vector<16x64xf32>
    %182 = math.tanh %181 : vector<16x64xf32>
    %cst_77 = arith.constant 1.000000e+00 : f32
    %183 = vector.broadcast %cst_77 : f32 to vector<16x64xf32>
    %184 = arith.addf %183, %182 : vector<16x64xf32>
    %185 = arith.mulf %174, %184 : vector<16x64xf32>
    %186 = arith.truncf %185 : vector<16x64xf32> to vector<16x64xbf16>
    %c0_78 = arith.constant 0 : index
    %c0_79 = arith.constant 0 : index
    %c0_80 = arith.constant 0 : index
    %187 = vector.load %arg12[%c0_78, %c0_79, %c0_80] : memref<2x64x32xbf16, #tpu.memory_space<vmem>>, vector<1x64x32xbf16>
    %188 = vector.shape_cast %187 : vector<1x64x32xbf16> to vector<64x32xbf16>
    %cst_81 = arith.constant dense<0.000000e+00> : vector<16x32xf32>
    %189 = tpu.matmul %186, %188, %cst_81 {dimension_numbers = #tpu.dot_dimension_numbers<[1], [0], [0], [1], [0, 0, 1, 1], [], []>} : vector<16x64xbf16>, vector<64x32xbf16>, vector<16x32xf32> -> vector<16x32xf32>
    %190 = arith.addf %138, %189 : vector<16x32xf32>
    %c0_82 = arith.constant 0 : index
    %c0_83 = arith.constant 0 : index
    %c0_84 = arith.constant 0 : index
    %191 = vector.load %arg13[%c0_82, %c0_83, %c0_84] : memref<2x1x32xf32, #tpu.memory_space<vmem>>, vector<1x1x32xf32>
    %192 = vector.shape_cast %191 : vector<1x1x32xf32> to vector<1x32xf32>
    %193 = vector.broadcast %192 : vector<1x32xf32> to vector<16x32xf32>
    %194 = arith.addf %190, %193 : vector<16x32xf32>
    %c1_85 = arith.constant 1 : index
    %c0_86 = arith.constant 0 : index
    %c0_87 = arith.constant 0 : index
    %195 = vector.load %arg3[%c1_85, %c0_86, %c0_87] : memref<2x1x32xf32, #tpu.memory_space<vmem>>, vector<1x1x32xf32>
    %196 = vector.shape_cast %195 : vector<1x1x32xf32> to vector<1x32xf32>
    %c1_88 = arith.constant 1 : index
    %c0_89 = arith.constant 0 : index
    %c0_90 = arith.constant 0 : index
    %197 = vector.load %arg4[%c1_88, %c0_89, %c0_90] : memref<2x1x32xf32, #tpu.memory_space<vmem>>, vector<1x1x32xf32>
    %198 = vector.shape_cast %197 : vector<1x1x32xf32> to vector<1x32xf32>
    %cst_91 = arith.constant dense<0.000000e+00> : vector<16xf32>
    %199 = vector.multi_reduction <add>, %194, %cst_91 [1] : vector<16x32xf32> to vector<16xf32>
    %200 = vector.shape_cast %199 : vector<16xf32> to vector<16x1xf32>
    %cst_92 = arith.constant 3.200000e+01 : f32
    %201 = vector.broadcast %cst_92 : f32 to vector<16x1xf32>
    %202 = arith.divf %200, %201 : vector<16x1xf32>
    %203 = vector.broadcast %202 : vector<16x1xf32> to vector<16x32xf32>
    %204 = arith.subf %194, %203 : vector<16x32xf32>
    %205 = arith.mulf %204, %204 : vector<16x32xf32>
    %cst_93 = arith.constant dense<0.000000e+00> : vector<16xf32>
    %206 = vector.multi_reduction <add>, %205, %cst_93 [1] : vector<16x32xf32> to vector<16xf32>
    %207 = vector.shape_cast %206 : vector<16xf32> to vector<16x1xf32>
    %cst_94 = arith.constant 3.200000e+01 : f32
    %208 = vector.broadcast %cst_94 : f32 to vector<16x1xf32>
    %209 = arith.divf %207, %208 : vector<16x1xf32>
    %210 = vector.broadcast %202 : vector<16x1xf32> to vector<16x32xf32>
    %211 = arith.subf %194, %210 : vector<16x32xf32>
    %cst_95 = arith.constant 9.99999974E-6 : f32
    %212 = vector.broadcast %cst_95 : f32 to vector<16x1xf32>
    %213 = arith.addf %209, %212 : vector<16x1xf32>
    %214 = math.rsqrt %213 : vector<16x1xf32>
    %215 = vector.broadcast %214 : vector<16x1xf32> to vector<16x32xf32>
    %216 = arith.mulf %211, %215 : vector<16x32xf32>
    %217 = vector.broadcast %196 : vector<1x32xf32> to vector<16x32xf32>
    %218 = arith.mulf %216, %217 : vector<16x32xf32>
    %219 = vector.broadcast %198 : vector<1x32xf32> to vector<16x32xf32>
    %220 = arith.addf %218, %219 : vector<16x32xf32>
    %221 = arith.truncf %220 : vector<16x32xf32> to vector<16x32xbf16>
    %c1_96 = arith.constant 1 : index
    %c0_97 = arith.constant 0 : index
    %c0_98 = arith.constant 0 : index
    %222 = vector.load %arg5[%c1_96, %c0_97, %c0_98] : memref<2x32x96xbf16, #tpu.memory_space<vmem>>, vector<1x32x96xbf16>
    %223 = vector.shape_cast %222 : vector<1x32x96xbf16> to vector<32x96xbf16>
    %cst_99 = arith.constant dense<0.000000e+00> : vector<16x96xf32>
    %224 = tpu.matmul %221, %223, %cst_99 {dimension_numbers = #tpu.dot_dimension_numbers<[1], [0], [0], [1], [0, 0, 1, 1], [], []>} : vector<16x32xbf16>, vector<32x96xbf16>, vector<16x96xf32> -> vector<16x96xf32>
    %225 = vector.shape_cast %224 : vector<16x96xf32> to vector<2x8x96xf32>
    %226 = arith.truncf %225 : vector<2x8x96xf32> to vector<2x8x96xbf16>
    %cst_100 = arith.constant 0.000000e+00 : f32
    %227 = vector.broadcast %cst_100 : f32 to vector<16x32xf32>
    %228 = vector.extract_strided_slice %226 {offsets = [0, 0, 0], sizes = [2, 8, 8], strides = [1, 1, 1]} : vector<2x8x96xbf16> to vector<2x8x8xbf16>
    %229 = vector.extract_strided_slice %226 {offsets = [0, 0, 32], sizes = [2, 8, 8], strides = [1, 1, 1]} : vector<2x8x96xbf16> to vector<2x8x8xbf16>
    %230 = vector.extract_strided_slice %226 {offsets = [0, 0, 64], sizes = [2, 8, 8], strides = [1, 1, 1]} : vector<2x8x96xbf16> to vector<2x8x8xbf16>
    %cst_101 = arith.constant dense<0.000000e+00> : vector<2x8x8xf32>
    %231 = tpu.matmul %228, %229, %cst_101 {dimension_numbers = #tpu.dot_dimension_numbers<[2], [2], [1], [1], [0, 0, 0, 1, 1, 1], [0], [0]>} : vector<2x8x8xbf16>, vector<2x8x8xbf16>, vector<2x8x8xf32> -> vector<2x8x8xf32>
    %232 = vector.broadcast %4 : vector<2x1x8xf32> to vector<2x8x8xf32>
    %233 = arith.addf %231, %232 : vector<2x8x8xf32>
    %cst_102 = arith.constant dense<0xFF800000> : vector<2x8xf32>
    %234 = vector.multi_reduction <maximumf>, %233, %cst_102 [2] : vector<2x8x8xf32> to vector<2x8xf32>
    %235 = vector.shape_cast %234 : vector<2x8xf32> to vector<2x8x1xf32>
    %236 = vector.broadcast %235 : vector<2x8x1xf32> to vector<2x8x8xf32>
    %237 = arith.subf %233, %236 : vector<2x8x8xf32>
    %238 = math.exp %237 : vector<2x8x8xf32>
    %cst_103 = arith.constant dense<0.000000e+00> : vector<2x8xf32>
    %239 = vector.multi_reduction <add>, %238, %cst_103 [2] : vector<2x8x8xf32> to vector<2x8xf32>
    %240 = vector.shape_cast %239 : vector<2x8xf32> to vector<2x8x1xf32>
    %241 = tpu.reciprocal %240 {approx = true} : vector<2x8x1xf32> -> vector<2x8x1xf32>
    %242 = vector.broadcast %241 : vector<2x8x1xf32> to vector<2x8x8xf32>
    %243 = arith.mulf %238, %242 : vector<2x8x8xf32>
    %244 = arith.truncf %243 : vector<2x8x8xf32> to vector<2x8x8xbf16>
    %cst_104 = arith.constant dense<0.000000e+00> : vector<2x8x8xf32>
    %245 = tpu.matmul %244, %230, %cst_104 {dimension_numbers = #tpu.dot_dimension_numbers<[2], [1], [1], [2], [0, 0, 0, 1, 1, 2], [0], [0]>} : vector<2x8x8xbf16>, vector<2x8x8xbf16>, vector<2x8x8xf32> -> vector<2x8x8xf32>
    %246 = vector.shape_cast %245 : vector<2x8x8xf32> to vector<16x8xf32>
    %247 = arith.truncf %246 : vector<16x8xf32> to vector<16x8xbf16>
    %c1_105 = arith.constant 1 : index
    %c0_106 = arith.constant 0 : index
    %c0_107 = arith.constant 0 : index
    %c0_108 = arith.constant 0 : index
    %248 = vector.load %arg6[%c1_105, %c0_106, %c0_107, %c0_108] : memref<2x4x8x32xbf16, #tpu.memory_space<vmem>>, vector<1x1x8x32xbf16>
    %249 = vector.shape_cast %248 : vector<1x1x8x32xbf16> to vector<8x32xbf16>
    %cst_109 = arith.constant dense<0.000000e+00> : vector<16x32xf32>
    %250 = tpu.matmul %247, %249, %cst_109 {dimension_numbers = #tpu.dot_dimension_numbers<[1], [0], [0], [1], [0, 0, 1, 1], [], []>} : vector<16x8xbf16>, vector<8x32xbf16>, vector<16x32xf32> -> vector<16x32xf32>
    %251 = arith.addf %227, %250 : vector<16x32xf32>
    %252 = vector.extract_strided_slice %226 {offsets = [0, 0, 8], sizes = [2, 8, 8], strides = [1, 1, 1]} : vector<2x8x96xbf16> to vector<2x8x8xbf16>
    %253 = vector.extract_strided_slice %226 {offsets = [0, 0, 40], sizes = [2, 8, 8], strides = [1, 1, 1]} : vector<2x8x96xbf16> to vector<2x8x8xbf16>
    %254 = vector.extract_strided_slice %226 {offsets = [0, 0, 72], sizes = [2, 8, 8], strides = [1, 1, 1]} : vector<2x8x96xbf16> to vector<2x8x8xbf16>
    %cst_110 = arith.constant dense<0.000000e+00> : vector<2x8x8xf32>
    %255 = tpu.matmul %252, %253, %cst_110 {dimension_numbers = #tpu.dot_dimension_numbers<[2], [2], [1], [1], [0, 0, 0, 1, 1, 1], [0], [0]>} : vector<2x8x8xbf16>, vector<2x8x8xbf16>, vector<2x8x8xf32> -> vector<2x8x8xf32>
    %256 = vector.broadcast %4 : vector<2x1x8xf32> to vector<2x8x8xf32>
    %257 = arith.addf %255, %256 : vector<2x8x8xf32>
    %cst_111 = arith.constant dense<0xFF800000> : vector<2x8xf32>
    %258 = vector.multi_reduction <maximumf>, %257, %cst_111 [2] : vector<2x8x8xf32> to vector<2x8xf32>
    %259 = vector.shape_cast %258 : vector<2x8xf32> to vector<2x8x1xf32>
    %260 = vector.broadcast %259 : vector<2x8x1xf32> to vector<2x8x8xf32>
    %261 = arith.subf %257, %260 : vector<2x8x8xf32>
    %262 = math.exp %261 : vector<2x8x8xf32>
    %cst_112 = arith.constant dense<0.000000e+00> : vector<2x8xf32>
    %263 = vector.multi_reduction <add>, %262, %cst_112 [2] : vector<2x8x8xf32> to vector<2x8xf32>
    %264 = vector.shape_cast %263 : vector<2x8xf32> to vector<2x8x1xf32>
    %265 = tpu.reciprocal %264 {approx = true} : vector<2x8x1xf32> -> vector<2x8x1xf32>
    %266 = vector.broadcast %265 : vector<2x8x1xf32> to vector<2x8x8xf32>
    %267 = arith.mulf %262, %266 : vector<2x8x8xf32>
    %268 = arith.truncf %267 : vector<2x8x8xf32> to vector<2x8x8xbf16>
    %cst_113 = arith.constant dense<0.000000e+00> : vector<2x8x8xf32>
    %269 = tpu.matmul %268, %254, %cst_113 {dimension_numbers = #tpu.dot_dimension_numbers<[2], [1], [1], [2], [0, 0, 0, 1, 1, 2], [0], [0]>} : vector<2x8x8xbf16>, vector<2x8x8xbf16>, vector<2x8x8xf32> -> vector<2x8x8xf32>
    %270 = vector.shape_cast %269 : vector<2x8x8xf32> to vector<16x8xf32>
    %271 = arith.truncf %270 : vector<16x8xf32> to vector<16x8xbf16>
    %c1_114 = arith.constant 1 : index
    %c1_115 = arith.constant 1 : index
    %c0_116 = arith.constant 0 : index
    %c0_117 = arith.constant 0 : index
    %272 = vector.load %arg6[%c1_114, %c1_115, %c0_116, %c0_117] : memref<2x4x8x32xbf16, #tpu.memory_space<vmem>>, vector<1x1x8x32xbf16>
    %273 = vector.shape_cast %272 : vector<1x1x8x32xbf16> to vector<8x32xbf16>
    %cst_118 = arith.constant dense<0.000000e+00> : vector<16x32xf32>
    %274 = tpu.matmul %271, %273, %cst_118 {dimension_numbers = #tpu.dot_dimension_numbers<[1], [0], [0], [1], [0, 0, 1, 1], [], []>} : vector<16x8xbf16>, vector<8x32xbf16>, vector<16x32xf32> -> vector<16x32xf32>
    %275 = arith.addf %251, %274 : vector<16x32xf32>
    %276 = vector.extract_strided_slice %226 {offsets = [0, 0, 16], sizes = [2, 8, 8], strides = [1, 1, 1]} : vector<2x8x96xbf16> to vector<2x8x8xbf16>
    %277 = vector.extract_strided_slice %226 {offsets = [0, 0, 48], sizes = [2, 8, 8], strides = [1, 1, 1]} : vector<2x8x96xbf16> to vector<2x8x8xbf16>
    %278 = vector.extract_strided_slice %226 {offsets = [0, 0, 80], sizes = [2, 8, 8], strides = [1, 1, 1]} : vector<2x8x96xbf16> to vector<2x8x8xbf16>
    %cst_119 = arith.constant dense<0.000000e+00> : vector<2x8x8xf32>
    %279 = tpu.matmul %276, %277, %cst_119 {dimension_numbers = #tpu.dot_dimension_numbers<[2], [2], [1], [1], [0, 0, 0, 1, 1, 1], [0], [0]>} : vector<2x8x8xbf16>, vector<2x8x8xbf16>, vector<2x8x8xf32> -> vector<2x8x8xf32>
    %280 = vector.broadcast %4 : vector<2x1x8xf32> to vector<2x8x8xf32>
    %281 = arith.addf %279, %280 : vector<2x8x8xf32>
    %cst_120 = arith.constant dense<0xFF800000> : vector<2x8xf32>
    %282 = vector.multi_reduction <maximumf>, %281, %cst_120 [2] : vector<2x8x8xf32> to vector<2x8xf32>
    %283 = vector.shape_cast %282 : vector<2x8xf32> to vector<2x8x1xf32>
    %284 = vector.broadcast %283 : vector<2x8x1xf32> to vector<2x8x8xf32>
    %285 = arith.subf %281, %284 : vector<2x8x8xf32>
    %286 = math.exp %285 : vector<2x8x8xf32>
    %cst_121 = arith.constant dense<0.000000e+00> : vector<2x8xf32>
    %287 = vector.multi_reduction <add>, %286, %cst_121 [2] : vector<2x8x8xf32> to vector<2x8xf32>
    %288 = vector.shape_cast %287 : vector<2x8xf32> to vector<2x8x1xf32>
    %289 = tpu.reciprocal %288 {approx = true} : vector<2x8x1xf32> -> vector<2x8x1xf32>
    %290 = vector.broadcast %289 : vector<2x8x1xf32> to vector<2x8x8xf32>
    %291 = arith.mulf %286, %290 : vector<2x8x8xf32>
    %292 = arith.truncf %291 : vector<2x8x8xf32> to vector<2x8x8xbf16>
    %cst_122 = arith.constant dense<0.000000e+00> : vector<2x8x8xf32>
    %293 = tpu.matmul %292, %278, %cst_122 {dimension_numbers = #tpu.dot_dimension_numbers<[2], [1], [1], [2], [0, 0, 0, 1, 1, 2], [0], [0]>} : vector<2x8x8xbf16>, vector<2x8x8xbf16>, vector<2x8x8xf32> -> vector<2x8x8xf32>
    %294 = vector.shape_cast %293 : vector<2x8x8xf32> to vector<16x8xf32>
    %295 = arith.truncf %294 : vector<16x8xf32> to vector<16x8xbf16>
    %c1_123 = arith.constant 1 : index
    %c2_124 = arith.constant 2 : index
    %c0_125 = arith.constant 0 : index
    %c0_126 = arith.constant 0 : index
    %296 = vector.load %arg6[%c1_123, %c2_124, %c0_125, %c0_126] : memref<2x4x8x32xbf16, #tpu.memory_space<vmem>>, vector<1x1x8x32xbf16>
    %297 = vector.shape_cast %296 : vector<1x1x8x32xbf16> to vector<8x32xbf16>
    %cst_127 = arith.constant dense<0.000000e+00> : vector<16x32xf32>
    %298 = tpu.matmul %295, %297, %cst_127 {dimension_numbers = #tpu.dot_dimension_numbers<[1], [0], [0], [1], [0, 0, 1, 1], [], []>} : vector<16x8xbf16>, vector<8x32xbf16>, vector<16x32xf32> -> vector<16x32xf32>
    %299 = arith.addf %275, %298 : vector<16x32xf32>
    %300 = vector.extract_strided_slice %226 {offsets = [0, 0, 24], sizes = [2, 8, 8], strides = [1, 1, 1]} : vector<2x8x96xbf16> to vector<2x8x8xbf16>
    %301 = vector.extract_strided_slice %226 {offsets = [0, 0, 56], sizes = [2, 8, 8], strides = [1, 1, 1]} : vector<2x8x96xbf16> to vector<2x8x8xbf16>
    %302 = vector.extract_strided_slice %226 {offsets = [0, 0, 88], sizes = [2, 8, 8], strides = [1, 1, 1]} : vector<2x8x96xbf16> to vector<2x8x8xbf16>
    %cst_128 = arith.constant dense<0.000000e+00> : vector<2x8x8xf32>
    %303 = tpu.matmul %300, %301, %cst_128 {dimension_numbers = #tpu.dot_dimension_numbers<[2], [2], [1], [1], [0, 0, 0, 1, 1, 1], [0], [0]>} : vector<2x8x8xbf16>, vector<2x8x8xbf16>, vector<2x8x8xf32> -> vector<2x8x8xf32>
    %304 = vector.broadcast %4 : vector<2x1x8xf32> to vector<2x8x8xf32>
    %305 = arith.addf %303, %304 : vector<2x8x8xf32>
    %cst_129 = arith.constant dense<0xFF800000> : vector<2x8xf32>
    %306 = vector.multi_reduction <maximumf>, %305, %cst_129 [2] : vector<2x8x8xf32> to vector<2x8xf32>
    %307 = vector.shape_cast %306 : vector<2x8xf32> to vector<2x8x1xf32>
    %308 = vector.broadcast %307 : vector<2x8x1xf32> to vector<2x8x8xf32>
    %309 = arith.subf %305, %308 : vector<2x8x8xf32>
    %310 = math.exp %309 : vector<2x8x8xf32>
    %cst_130 = arith.constant dense<0.000000e+00> : vector<2x8xf32>
    %311 = vector.multi_reduction <add>, %310, %cst_130 [2] : vector<2x8x8xf32> to vector<2x8xf32>
    %312 = vector.shape_cast %311 : vector<2x8xf32> to vector<2x8x1xf32>
    %313 = tpu.reciprocal %312 {approx = true} : vector<2x8x1xf32> -> vector<2x8x1xf32>
    %314 = vector.broadcast %313 : vector<2x8x1xf32> to vector<2x8x8xf32>
    %315 = arith.mulf %310, %314 : vector<2x8x8xf32>
    %316 = arith.truncf %315 : vector<2x8x8xf32> to vector<2x8x8xbf16>
    %cst_131 = arith.constant dense<0.000000e+00> : vector<2x8x8xf32>
    %317 = tpu.matmul %316, %302, %cst_131 {dimension_numbers = #tpu.dot_dimension_numbers<[2], [1], [1], [2], [0, 0, 0, 1, 1, 2], [0], [0]>} : vector<2x8x8xbf16>, vector<2x8x8xbf16>, vector<2x8x8xf32> -> vector<2x8x8xf32>
    %318 = vector.shape_cast %317 : vector<2x8x8xf32> to vector<16x8xf32>
    %319 = arith.truncf %318 : vector<16x8xf32> to vector<16x8xbf16>
    %c1_132 = arith.constant 1 : index
    %c3_133 = arith.constant 3 : index
    %c0_134 = arith.constant 0 : index
    %c0_135 = arith.constant 0 : index
    %320 = vector.load %arg6[%c1_132, %c3_133, %c0_134, %c0_135] : memref<2x4x8x32xbf16, #tpu.memory_space<vmem>>, vector<1x1x8x32xbf16>
    %321 = vector.shape_cast %320 : vector<1x1x8x32xbf16> to vector<8x32xbf16>
    %cst_136 = arith.constant dense<0.000000e+00> : vector<16x32xf32>
    %322 = tpu.matmul %319, %321, %cst_136 {dimension_numbers = #tpu.dot_dimension_numbers<[1], [0], [0], [1], [0, 0, 1, 1], [], []>} : vector<16x8xbf16>, vector<8x32xbf16>, vector<16x32xf32> -> vector<16x32xf32>
    %323 = arith.addf %299, %322 : vector<16x32xf32>
    %324 = arith.addf %194, %323 : vector<16x32xf32>
    %c1_137 = arith.constant 1 : index
    %c0_138 = arith.constant 0 : index
    %c0_139 = arith.constant 0 : index
    %325 = vector.load %arg7[%c1_137, %c0_138, %c0_139] : memref<2x1x32xf32, #tpu.memory_space<vmem>>, vector<1x1x32xf32>
    %326 = vector.shape_cast %325 : vector<1x1x32xf32> to vector<1x32xf32>
    %327 = vector.broadcast %326 : vector<1x32xf32> to vector<16x32xf32>
    %328 = arith.addf %324, %327 : vector<16x32xf32>
    %c1_140 = arith.constant 1 : index
    %c0_141 = arith.constant 0 : index
    %c0_142 = arith.constant 0 : index
    %329 = vector.load %arg8[%c1_140, %c0_141, %c0_142] : memref<2x1x32xf32, #tpu.memory_space<vmem>>, vector<1x1x32xf32>
    %330 = vector.shape_cast %329 : vector<1x1x32xf32> to vector<1x32xf32>
    %c1_143 = arith.constant 1 : index
    %c0_144 = arith.constant 0 : index
    %c0_145 = arith.constant 0 : index
    %331 = vector.load %arg9[%c1_143, %c0_144, %c0_145] : memref<2x1x32xf32, #tpu.memory_space<vmem>>, vector<1x1x32xf32>
    %332 = vector.shape_cast %331 : vector<1x1x32xf32> to vector<1x32xf32>
    %cst_146 = arith.constant dense<0.000000e+00> : vector<16xf32>
    %333 = vector.multi_reduction <add>, %328, %cst_146 [1] : vector<16x32xf32> to vector<16xf32>
    %334 = vector.shape_cast %333 : vector<16xf32> to vector<16x1xf32>
    %cst_147 = arith.constant 3.200000e+01 : f32
    %335 = vector.broadcast %cst_147 : f32 to vector<16x1xf32>
    %336 = arith.divf %334, %335 : vector<16x1xf32>
    %337 = vector.broadcast %336 : vector<16x1xf32> to vector<16x32xf32>
    %338 = arith.subf %328, %337 : vector<16x32xf32>
    %339 = arith.mulf %338, %338 : vector<16x32xf32>
    %cst_148 = arith.constant dense<0.000000e+00> : vector<16xf32>
    %340 = vector.multi_reduction <add>, %339, %cst_148 [1] : vector<16x32xf32> to vector<16xf32>
    %341 = vector.shape_cast %340 : vector<16xf32> to vector<16x1xf32>
    %cst_149 = arith.constant 3.200000e+01 : f32
    %342 = vector.broadcast %cst_149 : f32 to vector<16x1xf32>
    %343 = arith.divf %341, %342 : vector<16x1xf32>
    %344 = vector.broadcast %336 : vector<16x1xf32> to vector<16x32xf32>
    %345 = arith.subf %328, %344 : vector<16x32xf32>
    %cst_150 = arith.constant 9.99999974E-6 : f32
    %346 = vector.broadcast %cst_150 : f32 to vector<16x1xf32>
    %347 = arith.addf %343, %346 : vector<16x1xf32>
    %348 = math.rsqrt %347 : vector<16x1xf32>
    %349 = vector.broadcast %348 : vector<16x1xf32> to vector<16x32xf32>
    %350 = arith.mulf %345, %349 : vector<16x32xf32>
    %351 = vector.broadcast %330 : vector<1x32xf32> to vector<16x32xf32>
    %352 = arith.mulf %350, %351 : vector<16x32xf32>
    %353 = vector.broadcast %332 : vector<1x32xf32> to vector<16x32xf32>
    %354 = arith.addf %352, %353 : vector<16x32xf32>
    %355 = arith.truncf %354 : vector<16x32xf32> to vector<16x32xbf16>
    %c1_151 = arith.constant 1 : index
    %c0_152 = arith.constant 0 : index
    %c0_153 = arith.constant 0 : index
    %356 = vector.load %arg10[%c1_151, %c0_152, %c0_153] : memref<2x32x64xbf16, #tpu.memory_space<vmem>>, vector<1x32x64xbf16>
    %357 = vector.shape_cast %356 : vector<1x32x64xbf16> to vector<32x64xbf16>
    %cst_154 = arith.constant dense<0.000000e+00> : vector<16x64xf32>
    %358 = tpu.matmul %355, %357, %cst_154 {dimension_numbers = #tpu.dot_dimension_numbers<[1], [0], [0], [1], [0, 0, 1, 1], [], []>} : vector<16x32xbf16>, vector<32x64xbf16>, vector<16x64xf32> -> vector<16x64xf32>
    %c1_155 = arith.constant 1 : index
    %c0_156 = arith.constant 0 : index
    %c0_157 = arith.constant 0 : index
    %359 = vector.load %arg11[%c1_155, %c0_156, %c0_157] : memref<2x1x64xf32, #tpu.memory_space<vmem>>, vector<1x1x64xf32>
    %360 = vector.shape_cast %359 : vector<1x1x64xf32> to vector<1x64xf32>
    %361 = vector.broadcast %360 : vector<1x64xf32> to vector<16x64xf32>
    %362 = arith.addf %358, %361 : vector<16x64xf32>
    %cst_158 = arith.constant 5.000000e-01 : f32
    %363 = vector.broadcast %cst_158 : f32 to vector<16x64xf32>
    %364 = arith.mulf %363, %362 : vector<16x64xf32>
    %cst_159 = arith.constant 4.471500e-02 : f32
    %365 = vector.broadcast %cst_159 : f32 to vector<16x64xf32>
    %366 = arith.mulf %365, %362 : vector<16x64xf32>
    %367 = arith.mulf %366, %362 : vector<16x64xf32>
    %368 = arith.mulf %367, %362 : vector<16x64xf32>
    %369 = arith.addf %362, %368 : vector<16x64xf32>
    %cst_160 = arith.constant 0.797884583 : f32
    %370 = vector.broadcast %cst_160 : f32 to vector<16x64xf32>
    %371 = arith.mulf %370, %369 : vector<16x64xf32>
    %372 = math.tanh %371 : vector<16x64xf32>
    %cst_161 = arith.constant 1.000000e+00 : f32
    %373 = vector.broadcast %cst_161 : f32 to vector<16x64xf32>
    %374 = arith.addf %373, %372 : vector<16x64xf32>
    %375 = arith.mulf %364, %374 : vector<16x64xf32>
    %376 = arith.truncf %375 : vector<16x64xf32> to vector<16x64xbf16>
    %c1_162 = arith.constant 1 : index
    %c0_163 = arith.constant 0 : index
    %c0_164 = arith.constant 0 : index
    %377 = vector.load %arg12[%c1_162, %c0_163, %c0_164] : memref<2x64x32xbf16, #tpu.memory_space<vmem>>, vector<1x64x32xbf16>
    %378 = vector.shape_cast %377 : vector<1x64x32xbf16> to vector<64x32xbf16>
    %cst_165 = arith.constant dense<0.000000e+00> : vector<16x32xf32>
    %379 = tpu.matmul %376, %378, %cst_165 {dimension_numbers = #tpu.dot_dimension_numbers<[1], [0], [0], [1], [0, 0, 1, 1], [], []>} : vector<16x64xbf16>, vector<64x32xbf16>, vector<16x32xf32> -> vector<16x32xf32>
    %380 = arith.addf %328, %379 : vector<16x32xf32>
    %c1_166 = arith.constant 1 : index
    %c0_167 = arith.constant 0 : index
    %c0_168 = arith.constant 0 : index
    %381 = vector.load %arg13[%c1_166, %c0_167, %c0_168] : memref<2x1x32xf32, #tpu.memory_space<vmem>>, vector<1x1x32xf32>
    %382 = vector.shape_cast %381 : vector<1x1x32xf32> to vector<1x32xf32>
    %383 = vector.broadcast %382 : vector<1x32xf32> to vector<16x32xf32>
    %384 = arith.addf %380, %383 : vector<16x32xf32>
    %c0_169 = arith.constant 0 : index
    %c0_170 = arith.constant 0 : index
    %385 = vector.load %arg14[%c0_169, %c0_170] : memref<1x32xf32, #tpu.memory_space<vmem>>, vector<1x32xf32>
    %c0_171 = arith.constant 0 : index
    %c0_172 = arith.constant 0 : index
    %386 = vector.load %arg15[%c0_171, %c0_172] : memref<1x32xf32, #tpu.memory_space<vmem>>, vector<1x32xf32>
    %cst_173 = arith.constant dense<0.000000e+00> : vector<16xf32>
    %387 = vector.multi_reduction <add>, %384, %cst_173 [1] : vector<16x32xf32> to vector<16xf32>
    %388 = vector.shape_cast %387 : vector<16xf32> to vector<16x1xf32>
    %cst_174 = arith.constant 3.200000e+01 : f32
    %389 = vector.broadcast %cst_174 : f32 to vector<16x1xf32>
    %390 = arith.divf %388, %389 : vector<16x1xf32>
    %391 = vector.broadcast %390 : vector<16x1xf32> to vector<16x32xf32>
    %392 = arith.subf %384, %391 : vector<16x32xf32>
    %393 = arith.mulf %392, %392 : vector<16x32xf32>
    %cst_175 = arith.constant dense<0.000000e+00> : vector<16xf32>
    %394 = vector.multi_reduction <add>, %393, %cst_175 [1] : vector<16x32xf32> to vector<16xf32>
    %395 = vector.shape_cast %394 : vector<16xf32> to vector<16x1xf32>
    %cst_176 = arith.constant 3.200000e+01 : f32
    %396 = vector.broadcast %cst_176 : f32 to vector<16x1xf32>
    %397 = arith.divf %395, %396 : vector<16x1xf32>
    %398 = vector.broadcast %390 : vector<16x1xf32> to vector<16x32xf32>
    %399 = arith.subf %384, %398 : vector<16x32xf32>
    %cst_177 = arith.constant 9.99999974E-6 : f32
    %400 = vector.broadcast %cst_177 : f32 to vector<16x1xf32>
    %401 = arith.addf %397, %400 : vector<16x1xf32>
    %402 = math.rsqrt %401 : vector<16x1xf32>
    %403 = vector.broadcast %402 : vector<16x1xf32> to vector<16x32xf32>
    %404 = arith.mulf %399, %403 : vector<16x32xf32>
    %405 = vector.broadcast %385 : vector<1x32xf32> to vector<16x32xf32>
    %406 = arith.mulf %404, %405 : vector<16x32xf32>
    %407 = vector.broadcast %386 : vector<1x32xf32> to vector<16x32xf32>
    %408 = arith.addf %406, %407 : vector<16x32xf32>
    %c0_178 = arith.constant 0 : index
    %c0_179 = arith.constant 0 : index
    %409 = vector.load %arg16[%c0_178, %c0_179] : memref<16x32xf32, #tpu.memory_space<vmem>>, vector<16x32xf32>
    tpu.vector_store %arg16[%c0_178, %c0_179], %408 {strides = array<i32>} : memref<16x32xf32, #tpu.memory_space<vmem>>, vector<16x32xf32>,
    return
  }
}

</mosaic_0001>

<bundles_post_ra>
// kernel: bert_forward.1
= control target key start
LH: loop header
LB: loop body
LE: loop exit
PB: predicated region body
PF: predicated region fallthrough
CT: control target
= control target key end

     0   :  { %s4390_s0 = inlined_call_operand.vmem [shape: f32[16,32], index: 0, kind: input, shape index: {}]   ;;  %s4391_s1 = inlined_call_operand.vmem [shape: f32[16,32], index: 1, kind: input, shape index: {}]   ;;  %s4392_s2 = inlined_call_operand.vmem [shape: f32[2,8], index: 2, kind: input, shape index: {}]   ;;  %s4393_s3 = inlined_call_operand.vmem [shape: f32[2,1,32], index: 3, kind: input, shape index: {}]   ;;  %s4394_s4 = inlined_call_operand.vmem [shape: f32[2,1,32], index: 4, kind: input, shape index: {}]   ;;  %s4395_s5 = inlined_call_operand.vmem [shape: bf16[2,32,96], index: 5, kind: input, shape index: {}]   ;;  %s4396_s6 = inlined_call_operand.vmem [shape: bf16[2,4,8,32], index: 6, kind: input, shape index: {}]   ;;  %s4397_s7 = inlined_call_operand.vmem [shape: f32[2,1,32], index: 7, kind: input, shape index: {}]   ;;  %s4398_s8 = inlined_call_operand.vmem [shape: f32[2,1,32], index: 8, kind: input, shape index: {}]   ;;  %s4399_s9 = inlined_call_operand.vmem [shape: f32[2,1,32], index: 9, kind: input, shape index: {}]   ;;  %s4400_s10 = inlined_call_operand.vmem [shape: bf16[2,32,64], index: 10, kind: input, shape index: {}]   ;;  %s4401_s11 = inlined_call_operand.vmem [shape: f32[2,1,64], index: 11, kind: input, shape index: {}]   ;;  %s4402_s12 = inlined_call_operand.vmem [shape: bf16[2,64,32], index: 12, kind: input, shape index: {}]   ;;  %s4403_s13 = inlined_call_operand.vmem [shape: f32[2,1,32], index: 13, kind: input, shape index: {}]   ;;  %s4404_s14 = inlined_call_operand.vmem [shape: f32[1,32], index: 14, kind: input, shape index: {}]   ;;  %s4405_s15 = inlined_call_operand.vmem [shape: f32[1,32], index: 15, kind: input, shape index: {}]   ;;  %s4406_s16 = inlined_call_operand.hbm [shape: f32[16,32], index: 16, kind: output, shape index: {}]  }
   0x1   :  { %4412 = sst [smem:[#allocation5_spill]] %s4390_s0 }
   0x2   :  { %s4413_s23 = sld [smem:[#allocation5_spill]]  ;;  %v57_v1 = vld [vmem:[%s4391_s1] sm:$0xff]  ;;  %vm87_vm0 = vcmask 261120   ;;  %v58_v4 = vld [vmem:[%s4391_s1 + $0x8] sm:$0xff] }
   0x8   :  { %v55_v0 = vld [vmem:[%s4413_s23] sm:$0xff]  ;;  %v56_v2 = vld [vmem:[%s4413_s23 + $0x8] sm:$0xff] }
   0x9   :  { %v3774_v3 = vadd.f32 %v57_v1, %v55_v0  ;;  %v3779_v5 = vadd.f32 %v58_v4, %v56_v2 }
   0xb   :  { %v88_v6 = vsel %vm87_vm0, %v3774_v3, 0.0  ;;  %v91_v7 = vsel %vm87_vm0, %v3779_v5, 0.0 }
   0xc   :  { %89 = vadd.xlane.f32.xlu0 %v88_v6 }
  0x10   :  { %92 = vadd.xlane.f32.xlu0 %v91_v7 }
  0x11   :  { %21 = vsyncpa [#allocation3], 0  ;;  %v3531_v18 = vld [vmem:[%s4395_s5] sm:$0xff]   ;;  %v3663_v19 = vmov 0.0   ;;  %v3532_v20 = vld [vmem:[%s4395_s5 + $0x8] sm:$0xff]   ;;  %vm3664_vm1 = vmmov 0   ;;  %v74_v50 = vlaneseq }
  0x12   :  { %3218 = vmatprep.subr.bf16.mxu1 %v3663_v19  ;;  %3232 = vmatprep.subr.bf16.mxu0 %v3663_v19  ;;  %v3008_v29 = vld [vmem:[%s4393_s3] ss:$0 sm:$0xff]  ;;  %s3665_s22 = smov 96   ;;  %vm207_vm2 = vcmask 64512   ;;  %v3666_v48 = vmov 1966171168  }
  0x13   :  { %3219 = vmatpush3.bf16.msra.mxu1 %v3531_v18  ;;  %3222 = vmatprep.mubr.msk.bf16.mxu1 %vm3664_vm1, %v3663_v19  ;;  %v3009_v33 = vld [vmem:[%s4394_s4] ss:$0 sm:$0xff]  ;;  %v72_v49 = vunpack.c.l.s4 %v3666_v48  ;;  %v75_v52 = vshrl.u32 %v74_v50, 7  ;;  %s3668_s25 = smov 88   ;;  %vm332_vm3 = vcmask 1043456   ;;  %s3669_s26 = smov 120  }
  0x14   :  { %3220 = vmatprep.subr.bf16.mxu1 %v3663_v19  ;;  %3234 = vmatprep.mubr.msk.bf16.mxu0 %vm3664_vm1, %v3663_v19  ;;  %v3007_v53 = vld.sshfl [vmem:[%s4392_s2] sm:$0x11 pattern:$0x75316420]  ;;  %s3667_s2 = smov 64   ;;  %s3670_s27 = smov 56  }
  0x15   :  { %v73_v51 = vunpack.c.0.s8 %v72_v49  ;;  %v70_v55 = vcombine.high %v3007_v53, %v3007_v53  ;;  %v196_v57 = vsub.s32 0, %v75_v52  ;;  %s3671_s28 = smov 80   ;;  %s3672_s29 = smov 112   ;;  %vm1461_vm4 = vcmask 523264  }
  0x16   :  { %s3673_s18 = smov 48   ;;  %s3674_s19 = smov 72  }
  0x17   :  { %3221 = vmatpush3.bf16.msra.mxu1 %v3532_v20  ;;  %v76_v54 = vsub.s32 %v73_v51, %v75_v52  ;;  %s4410_s20 = smov 104   ;;  %s4408_s24 = smov 40  }
  0x18   :  { %3226 = vmatprep.subr.bf16.mxu1 %v3663_v19 }
  0x19   :  { %v77_v56 = vrot.slane %v3007_v53, %v76_v54  ;;  %v84_v58 = vrot.slane %v70_v55, %v76_v54 }
  0x1b   :  { %v3835_v59 = vrot.slane %v77_v56, %v196_v57  ;;  %v3837_v60 = vrot.slane %v84_v58, %v196_v57 }
  0x99   :  { %v90_v8 = vpop.xlane.xlu0 %89 }
  0x9a   :  { %v95_v9 = vmul.f32 0.03125, %v90_v8 }
  0x9c   :  { %v97_v10 = vsub.f32 %v3774_v3, %v95_v9 }
  0x9d   :  { %v93_v11 = vpop.xlane.xlu0 %92 }
  0x9e   :  { %v96_v12 = vmul.f32 0.03125, %v93_v11  ;;  %v99_v13 = vmul.f32 %v97_v10, %v97_v10 }
  0xa0   :  { %v98_v14 = vsub.f32 %v3779_v5, %v96_v12  ;;  %v101_v15 = vsel %vm87_vm0, %v99_v13, 0.0 }
  0xa1   :  { %102 = vadd.xlane.f32.xlu1 %v101_v15 }
  0xa2   :  { %v100_v16 = vmul.f32 %v98_v14, %v98_v14 }
  0xa4   :  { %v104_v17 = vsel %vm87_vm0, %v100_v16, 0.0 }
  0xa5   :  { %105 = vadd.xlane.f32.xlu1 %v104_v17 }
 0x12e   :  { %v103_v21 = vpop.xlane.xlu1 %102 }
 0x12f   :  { %v107_v22 = vmul.f32 0.03125, %v103_v21 }
 0x131   :  { %v109_v23 = vadd.f32 1e-05, %v107_v22 }
 0x132   :  { %v106_v24 = vpop.xlane.xlu1 %105 }
 0x133   :  { %3547 = vrsqrt.f32 %v109_v23  ;;  %v108_v25 = vmul.f32 0.03125, %v106_v24 }
 0x135   :  { %v110_v26 = vadd.f32 1e-05, %v108_v25 }
 0x137   :  { %3549 = vrsqrt.f32 %v110_v26 }
 0x13d   :  { %v3548_v27 = vpop.eup %3547 }
 0x13e   :  { %v113_v28 = vmul.f32 %v3548_v27, %v97_v10 }
 0x140   :  { %v121_v32 = vmul.f32 %v3008_v29, %v113_v28 }
 0x141   :  { %v3550_v30 = vpop.eup %3549 }
 0x142   :  { %v114_v31 = vmul.f32 %v3550_v30, %v98_v14  ;;  %v129_v35 = vadd.f32 %v3009_v33, %v121_v32 }
 0x144   :  { %v122_v34 = vmul.f32 %v3008_v29, %v114_v31 }
 0x146   :  { %v130_v36 = vadd.f32 %v3009_v33, %v122_v34 }
 0x148   :  { %v131_v37 = vpack.c.bf16 %v130_v36, %v129_v35 }
 0x14a   :  { %3223 = vmatmul.mubr.msk.bf16.vlgmr.msra.gmra.mrb[0].mxu1 %vm87_vm0, %v131_v37 }
 0x14b   :  { %3228 = vmatprep.mubr.msk.bf16.mxu1 %vm3664_vm1, %v3663_v19 }
 0x21d   :  { %v185_v38 = vpop.f32.mrb[0].mxu1 }
 0x21e   :  { %v3812_v39 = vpack.c.bf16 %v185_v38, %v185_v38  ;;  %v3224_v40 = vpop.f32.mrb[1].mxu1 }
 0x21f   :  { %v188_v41 = vpop.f32.mrb[2].mxu1 }
 0x220   :  { %v3814_v42 = vpack.c.bf16 %v188_v41, %v188_v41  ;;  %205 = vrot.lane.b32.xlu0 %v3812_v39, %s3665_s22  ;;  %v3225_v43 = vpop.f32.mrb[3].mxu1 }
 0x222   :  { %255 = vrot.lane.b32.xlu1 %v3814_v42, %s3665_s22 }
 0x292   :  { %v206_v44 = vpop.permute.xlu0 %205 }
 0x293   :  { %v212_v45 = vsel %vm207_vm2, %v206_v44, 0 }
 0x294   :  { %3227 = vmatpush3.bf16.xpose.msra.mxu1 %v212_v45  ;;  %v256_v46 = vpop.permute.xlu1 %255 }
 0x295   :  { %v261_v47 = vsel %vm207_vm2, %v256_v46, 0  ;;  %3238 = vmatprep.subr.bf16.mxu1 %v3663_v19 }
 0x296   :  { %3233 = vmatpush3.bf16.xpose.msra.mxu0 %v261_v47 }
 0x297   :  { %3244 = vmatprep.subr.bf16.mxu0 %v3663_v19 }
 0x29b   :  { %3229 = vmatmul.mubr.msk.bf16.vlgmr.msra.gmra.mrb[4].mxu1 %vm207_vm2, %v3812_v39 }
 0x29c   :  { %3240 = vmatprep.mubr.msk.bf16.mxu1 %vm3664_vm1, %v3663_v19 }
 0x29d   :  { %3235 = vmatmul.mubr.msk.bf16.vlgmr.msra.gmra.mrb[0].mxu0 %vm207_vm2, %v3814_v42 }
 0x29e   :  { %3246 = vmatprep.mubr.msk.bf16.mxu0 %vm3664_vm1, %v3663_v19 }
 0x36e   :  { %v248_v61 = vpop.f32.mrb[4].mxu1 }
 0x36f   :  { %v249_v62 = vadd.f32 %v248_v61, %v3835_v59  ;;  %v3230_v63 = vpop.f32.mrb[5].mxu1 }
 0x370   :  { %v251_v0 = vpop.f32.mrb[6].mxu1  ;;  %v297_v1 = vpop.f32.mrb[0].mxu0 }
 0x371   :  { %v298_v2 = vadd.f32 %v297_v1, %v3837_v60  ;;  %v3231_v4 = vpop.f32.mrb[7].mxu1  ;;  %v3236_v6 = vpop.f32.mrb[1].mxu0  ;;  %v303_v7 = vsel %vm207_vm2, %v249_v62, -inf }
 0x372   :  { %v300_v8 = vpop.f32.mrb[2].mxu0  ;;  %304 = vmax.xlane.f32.xlu1 %v303_v7 }
 0x373   :  { %v3237_v9 = vpop.f32.mrb[3].mxu0  ;;  %v306_v10 = vsel %vm207_vm2, %v298_v2, -inf }
 0x374   :  { %307 = vmax.xlane.f32.xlu0 %v306_v10 }
 0x383   :  { %376 = vrot.lane.b32.xlu1 %v3814_v42, %s3667_s2 }
 0x387   :  { %428 = vrot.lane.b32.xlu1 %v3812_v39, %s3668_s25 }
 0x3ff   :  { %v305_v11 = vpop.xlane.xlu1 %304 }
 0x400   :  { %v309_v12 = vsub.f32 %v249_v62, %v305_v11 }
 0x401   :  { %v308_v13 = vpop.xlane.xlu0 %307 }
 0x402   :  { %v311_v14 = vmul.f32 1.442695, %v309_v12  ;;  %v310_v15 = vsub.f32 %v298_v2, %v308_v13 }
 0x403   :  { %v377_v16 = vpop.permute.xlu1 %376 }
 0x404   :  { %3551 = vpow2.f32 %v311_v14  ;;  %v313_v17 = vmul.f32 1.442695, %v310_v15  ;;  %v382_v18 = vsel %vm332_vm3, %v377_v16, 0 }
 0x405   :  { %3245 = vmatpush3.bf16.msra.mxu0 %v382_v18 }
 0x406   :  { %3553 = vpow2.f32 %v313_v17  ;;  %3256 = vmatprep.subr.bf16.mxu0 %v3663_v19 }
 0x407   :  { %v429_v24 = vpop.permute.xlu1 %428 }
 0x408   :  { %v434_v35 = vsel %vm207_vm2, %v429_v24, 0 }
 0x40e   :  { %v3552_v20 = vpop.eup %3551 }
 0x40f   :  { %v315_v21 = vsel %vm207_vm2, %v3552_v20, 0.0 }
 0x410   :  { %v3554_v22 = vpop.eup %3553  ;;  %316 = vadd.xlane.f32.xlu0 %v315_v21  ;;  %v3021_v21 = vld [vmem:[%s4396_s6 + $0x4] sm:$0xf] }
 0x411   :  { %v318_v23 = vsel %vm207_vm2, %v3554_v22, 0.0  ;;  %v653_v24 = vsel %vm332_vm3, %v3021_v21, 0 }
 0x412   :  { %319 = vadd.xlane.f32.xlu1 %v318_v23 }
 0x423   :  { %478 = vrot.lane.b32.xlu1 %v3814_v42, %s3668_s25 }
 0x426   :  { %327 = vrot.lane.b32.xlu0 %v3812_v39, %s3667_s2 }
 0x427   :  { %476 = vrot.lane.b32.xlu1 %v3814_v42, %s3669_s26 }
 0x42a   :  { %426 = vrot.lane.b32.xlu0 %v3812_v39, %s3669_s26 }
 0x49d   :  { %v317_v25 = vpop.xlane.xlu0 %316 }
 0x49e   :  { %3555 = vrcp.f32 %v317_v25 }
 0x49f   :  { %v320_v26 = vpop.xlane.xlu1 %319 }
 0x4a0   :  { %3557 = vrcp.f32 %v320_v26  ;;  %v425_v26 = vld [vmem:[%s4396_s6] sm:$0xf] }
 0x4a1   :  { %v328_v27 = vpop.permute.xlu0 %327 }
 0x4a2   :  { %v334_v28 = vsel %vm332_vm3, %v328_v27, 0 }
 0x4a3   :  { %3239 = vmatpush3.bf16.msra.mxu1 %v334_v28  ;;  %v479_v34 = vpop.permute.xlu1 %478 }
 0x4a4   :  { %3250 = vmatprep.subr.bf16.mxu1 %v3663_v19  ;;  %v484_v37 = vsel %vm207_vm2, %v479_v34, 0 }
 0x4a5   :  { %v427_v38 = vpop.permute.xlu0 %426 }
 0x4a7   :  { %v477_v40 = vpop.permute.xlu1 %476 }
 0x4a8   :  { %v3556_v29 = vpop.eup %3555 }
 0x4a9   :  { %v323_v30 = vmul.f32 %v3556_v29, %v3552_v20  ;;  %v700_v29 = vsel %vm332_vm3, %v425_v26, 0 }
 0x4aa   :  { %v3558_v31 = vpop.eup %3557 }
 0x4ab   :  { %v324_v32 = vmul.f32 %v3558_v31, %v3554_v22  ;;  %v325_v33 = vpack.c.bf16 %v323_v30, %v323_v30 }
 0x4ad   :  { %3241 = vmatmul.mubr.msk.bf16.vlgmr.msra.gmra.mrb[8].mxu1 %vm207_vm2, %v325_v33  ;;  %v326_v36 = vpack.c.bf16 %v324_v32, %v324_v32 }
 0x4ae   :  { %3251 = vmatpush3.bf16.xpose.msra.mxu1 %v434_v35  ;;  %3252 = vmatprep.mubr.msk.bf16.mxu1 %vm3664_vm1, %v3663_v19 }
 0x4af   :  { %3247 = vmatmul.mubr.msk.bf16.vlgmr.msra.gmra.mrb[4].mxu0 %vm207_vm2, %v326_v36  ;;  %3262 = vmatprep.subr.bf16.mxu1 %v3663_v19 }
 0x4b0   :  { %3257 = vmatpush3.bf16.xpose.msra.mxu0 %v484_v37  ;;  %3258 = vmatprep.mubr.msk.bf16.mxu0 %vm3664_vm1, %v3663_v19 }
 0x4b1   :  { %3268 = vmatprep.subr.bf16.mxu0 %v3663_v19 }
 0x4b5   :  { %3253 = vmatmul.mubr.msk.bf16.vlgmr.msra.gmra.mrb[12].mxu1 %vm207_vm2, %v427_v38 }
 0x4b6   :  { %3264 = vmatprep.mubr.msk.bf16.mxu1 %vm3664_vm1, %v3663_v19 }
 0x4b7   :  { %3259 = vmatmul.mubr.msk.bf16.vlgmr.msra.gmra.mrb[8].mxu0 %vm207_vm2, %v477_v40 }
 0x4b8   :  { %3270 = vmatprep.mubr.msk.bf16.mxu0 %vm3664_vm1, %v3663_v19 }
 0x580   :  { %v3877_v41 = vpop.f32.mrb[8].mxu1 }
 0x581   :  { %v3242_v43 = vpop.f32.mrb[9].mxu1 }
 0x582   :  { %v373_v44 = vpop.f32.mrb[10].mxu1  ;;  %v3879_v45 = vpop.f32.mrb[4].mxu0 }
 0x583   :  { %v424_v46 = vpack.c.bf16 %v3879_v45, %v3877_v41  ;;  %v3243_v47 = vpop.f32.mrb[11].mxu1  ;;  %v3248_v48 = vpop.f32.mrb[5].mxu0 }
 0x584   :  { %v421_v49 = vpop.f32.mrb[6].mxu0 }
 0x585   :  { %v3249_v50 = vpop.f32.mrb[7].mxu0 }
 0x588   :  { %v470_v51 = vpop.f32.mrb[12].mxu1 }
 0x589   :  { %v471_v52 = vadd.f32 %v470_v51, %v3835_v59  ;;  %v3254_v53 = vpop.f32.mrb[13].mxu1 }
 0x58a   :  { %v473_v54 = vpop.f32.mrb[14].mxu1  ;;  %v520_v55 = vpop.f32.mrb[8].mxu0 }
 0x58b   :  { %v521_v56 = vadd.f32 %v520_v55, %v3837_v60  ;;  %v3255_v57 = vpop.f32.mrb[15].mxu1  ;;  %v3260_v58 = vpop.f32.mrb[9].mxu0  ;;  %v526_v61 = vsel %vm207_vm2, %v471_v52, -inf }
 0x58c   :  { %v523_v62 = vpop.f32.mrb[10].mxu0  ;;  %527 = vmax.xlane.f32.xlu0 %v526_v61 }
 0x58d   :  { %v3261_v63 = vpop.f32.mrb[11].mxu0  ;;  %v529_v0 = vsel %vm207_vm2, %v521_v56, -inf }
 0x58e   :  { %530 = vmax.xlane.f32.xlu1 %v529_v0 }
 0x59f   :  { %598 = vrot.lane.b32.xlu1 %v3814_v42, %s3670_s27 }
 0x5a3   :  { %745 = vrot.lane.b32.xlu1 %v3812_v39, %s3671_s28 }
 0x5a7   :  { %795 = vrot.lane.b32.xlu1 %v3814_v42, %s3671_s28 }
 0x5ab   :  { %793 = vrot.lane.b32.xlu1 %v3814_v42, %s3672_s29 }
 0x619   :  { %v528_v1 = vpop.xlane.xlu0 %527 }
 0x61a   :  { %v532_v2 = vsub.f32 %v471_v52, %v528_v1 }
 0x61b   :  { %v531_v4 = vpop.xlane.xlu1 %530 }
 0x61c   :  { %v534_v6 = vmul.f32 1.442695, %v532_v2  ;;  %v533_v7 = vsub.f32 %v521_v56, %v531_v4 }
 0x61e   :  { %3559 = vpow2.f32 %v534_v6  ;;  %v536_v8 = vmul.f32 1.442695, %v533_v7 }
 0x61f   :  { %v599_v9 = vpop.permute.xlu1 %598 }
 0x620   :  { %3561 = vpow2.f32 %v536_v8  ;;  %v604_v10 = vsel %vm332_vm3, %v599_v9, 0 }
 0x621   :  { %3269 = vmatpush3.bf16.msra.mxu0 %v604_v10 }
 0x622   :  { %3280 = vmatprep.subr.bf16.mxu0 %v3663_v19 }
 0x623   :  { %v746_v30 = vpop.permute.xlu1 %745 }
 0x624   :  { %v751_v44 = vsel %vm207_vm2, %v746_v30, 0 }
 0x627   :  { %v796_v31 = vpop.permute.xlu1 %795 }
 0x628   :  { %v3560_v11 = vpop.eup %3559  ;;  %v801_v32 = vsel %vm207_vm2, %v796_v31, 0 }
 0x629   :  { %v538_v12 = vsel %vm207_vm2, %v3560_v11, 0.0 }
 0x62a   :  { %v3562_v13 = vpop.eup %3561  ;;  %539 = vadd.xlane.f32.xlu0 %v538_v12 }
 0x62b   :  { %v541_v14 = vsel %vm207_vm2, %v3562_v13, 0.0  ;;  %v794_v33 = vpop.permute.xlu1 %793 }
 0x62e   :  { %542 = vadd.xlane.f32.xlu0 %v541_v14 }
 0x644   :  { %550 = vrot.lane.b32.xlu0 %v3812_v39, %s3670_s27 }
 0x648   :  { %743 = vrot.lane.b32.xlu0 %v3812_v39, %s3672_s29 }
 0x6b7   :  { %v540_v15 = vpop.xlane.xlu0 %539 }
 0x6b8   :  { %3563 = vrcp.f32 %v540_v15 }
 0x6bb   :  { %v543_v16 = vpop.xlane.xlu0 %542 }
 0x6bc   :  { %3565 = vrcp.f32 %v543_v16 }
 0x6bf   :  { %v551_v17 = vpop.permute.xlu0 %550 }
 0x6c0   :  { %v556_v18 = vsel %vm332_vm3, %v551_v17, 0 }
 0x6c1   :  { %3263 = vmatpush3.bf16.msra.mxu1 %v556_v18 }
 0x6c2   :  { %v3564_v20 = vpop.eup %3563  ;;  %3274 = vmatprep.subr.bf16.mxu1 %v3663_v19 }
 0x6c3   :  { %v546_v22 = vmul.f32 %v3564_v20, %v3560_v11  ;;  %v744_v48 = vpop.permute.xlu0 %743 }
 0x6c5   :  { %v548_v23 = vpack.c.bf16 %v546_v22, %v546_v22 }
 0x6c6   :  { %v3566_v25 = vpop.eup %3565 }
 0x6c7   :  { %v547_v27 = vmul.f32 %v3566_v25, %v3562_v13  ;;  %3265 = vmatmul.mubr.msk.bf16.vlgmr.msra.gmra.mrb[16].mxu1 %vm207_vm2, %v548_v23 }
 0x6c8   :  { %3275 = vmatpush3.bf16.msra.mxu1 %v653_v24  ;;  %3276 = vmatprep.mubr.msk.bf16.mxu1 %vm3664_vm1, %v3663_v19 }
 0x6c9   :  { %v549_v28 = vpack.c.bf16 %v547_v27, %v547_v27  ;;  %3286 = vmatprep.subr.bf16.mxu1 %v3663_v19 }
 0x6cb   :  { %3271 = vmatmul.mubr.msk.bf16.vlgmr.msra.gmra.mrb[12].mxu0 %vm207_vm2, %v549_v28 }
 0x6cc   :  { %3281 = vmatpush3.bf16.msra.mxu0 %v700_v29  ;;  %3282 = vmatprep.mubr.msk.bf16.mxu0 %vm3664_vm1, %v3663_v19 }
 0x6cd   :  { %3292 = vmatprep.subr.bf16.mxu0 %v3663_v19 }
 0x6d3   :  { %3283 = vmatmul.mubr.msk.bf16.vlgmr.msra.gmra.mrb[16].mxu0 %vm207_vm2, %v424_v46 }
 0x6d4   :  { %3294 = vmatprep.mubr.msk.bf16.mxu0 %vm3664_vm1, %v3663_v19 }
 0x6d5   :  { %3293 = vmatpush3.bf16.xpose.msra.mxu0 %v801_v32 }
 0x6d6   :  { %3304 = vmatprep.subr.bf16.mxu0 %v3663_v19 }
 0x6dc   :  { %3295 = vmatmul.mubr.msk.bf16.vlgmr.msra.gmra.mrb[20].mxu0 %vm207_vm2, %v794_v33 }
 0x6dd   :  { %3306 = vmatprep.mubr.msk.bf16.mxu0 %vm3664_vm1, %v3663_v19 }
 0x79a   :  { %v592_v34 = vpop.f32.mrb[16].mxu1 }
 0x79b   :  { %v3266_v35 = vpop.f32.mrb[17].mxu1 }
 0x79c   :  { %v595_v36 = vpop.f32.mrb[18].mxu1 }
 0x79d   :  { %v3267_v37 = vpop.f32.mrb[19].mxu1 }
 0x79e   :  { %v640_v38 = vpop.f32.mrb[12].mxu0 }
 0x79f   :  { %v646_v40 = vpack.c.bf16 %v640_v38, %v592_v34  ;;  %v3272_v41 = vpop.f32.mrb[13].mxu0 }
 0x7a0   :  { %v643_v43 = vpop.f32.mrb[14].mxu0 }
 0x7a1   :  { %v3273_v45 = vpop.f32.mrb[15].mxu0  ;;  %3277 = vmatmul.mubr.msk.bf16.vlgmr.msra.gmra.mrb[20].mxu1 %vm207_vm2, %v646_v40  ;;  %v3028_v40 = vld [vmem:[%s4396_s6 + $0x8] sm:$0xf] }
 0x7a2   :  { %3287 = vmatpush3.bf16.xpose.msra.mxu1 %v751_v44  ;;  %3288 = vmatprep.mubr.msk.bf16.mxu1 %vm3664_vm1, %v3663_v19  ;;  %v970_v41 = vsel %vm332_vm3, %v3028_v40, 0 }
 0x7a3   :  { %3298 = vmatprep.subr.bf16.mxu1 %v3663_v19 }
 0x7a6   :  { %v736_v46 = vpop.f32.mrb[16].mxu0 }
 0x7a7   :  { %v3284_v47 = vpop.f32.mrb[17].mxu0 }
 0x7a8   :  { %v739_v49 = vpop.f32.mrb[18].mxu0 }
 0x7a9   :  { %v3285_v50 = vpop.f32.mrb[19].mxu0  ;;  %3289 = vmatmul.mubr.msk.bf16.vlgmr.msra.gmra.mrb[24].mxu1 %vm207_vm2, %v744_v48 }
 0x7aa   :  { %3300 = vmatprep.mubr.msk.bf16.mxu1 %vm3664_vm1, %v3663_v19 }
 0x7af   :  { %v837_v51 = vpop.f32.mrb[20].mxu0 }
 0x7b0   :  { %v838_v52 = vadd.f32 %v837_v51, %v3837_v60  ;;  %v3296_v53 = vpop.f32.mrb[21].mxu0 }
 0x7b1   :  { %v840_v54 = vpop.f32.mrb[22].mxu0 }
 0x7b2   :  { %v3297_v55 = vpop.f32.mrb[23].mxu0  ;;  %v846_v56 = vsel %vm207_vm2, %v838_v52, -inf }
 0x7b3   :  { %847 = vmax.xlane.f32.xlu1 %v846_v56 }
 0x7c4   :  { %915 = vrot.lane.b32.xlu1 %v3814_v42, %s3673_s18 }
 0x7c8   :  { %1017 = vrot.lane.b32.xlu1 %v3812_v39, %s3674_s19 }
 0x7cc   :  { %1067 = vrot.lane.b32.xlu1 %v3814_v42, %s3674_s19 }
 0x7d0   :  { %1065 = vrot.lane.b32.xlu1 %v3814_v42, %s4410_s20 }
 0x840   :  { %v848_v57 = vpop.xlane.xlu1 %847 }
 0x841   :  { %v850_v62 = vsub.f32 %v838_v52, %v848_v57 }
 0x843   :  { %v853_v63 = vmul.f32 1.442695, %v850_v62 }
 0x844   :  { %v916_v58 = vpop.permute.xlu1 %915 }
 0x845   :  { %v921_v61 = vsel %vm332_vm3, %v916_v58, 0  ;;  %3567 = vpow2.f32 %v853_v63 }
 0x846   :  { %3305 = vmatpush3.bf16.msra.mxu0 %v921_v61 }
 0x847   :  { %3316 = vmatprep.subr.bf16.mxu0 %v3663_v19 }
 0x848   :  { %v1018_v25 = vpop.permute.xlu1 %1017 }
 0x849   :  { %v1023_v27 = vsel %vm207_vm2, %v1018_v25, 0 }
 0x84f   :  { %v3568_v14 = vpop.eup %3567 }
 0x850   :  { %v858_v15 = vsel %vm207_vm2, %v3568_v14, 0.0 }
 0x874   :  { %v689_v0 = vpop.f32.mrb[20].mxu1 }
 0x875   :  { %v3952_v1 = vadd.f32 %v736_v46, %v689_v0  ;;  %v3278_v2 = vpop.f32.mrb[21].mxu1 }
 0x876   :  { %v692_v4 = vpop.f32.mrb[22].mxu1 }
 0x877   :  { %v3954_v6 = vadd.f32 %v739_v49, %v692_v4  ;;  %v3279_v7 = vpop.f32.mrb[23].mxu1  ;;  %v1068_v49 = vpop.permute.xlu1 %1067 }
 0x878   :  { %v1073_v54 = vsel %vm207_vm2, %v1068_v49, 0 }
 0x87b   :  { %v1066_v56 = vpop.permute.xlu1 %1065 }
 0x87c   :  { %v787_v8 = vpop.f32.mrb[24].mxu1 }
 0x87d   :  { %v788_v9 = vadd.f32 %v787_v8, %v3835_v59  ;;  %v3290_v10 = vpop.f32.mrb[25].mxu1 }
 0x87e   :  { %v790_v11 = vpop.f32.mrb[26].mxu1 }
 0x87f   :  { %v3291_v12 = vpop.f32.mrb[27].mxu1  ;;  %v843_v13 = vsel %vm207_vm2, %v788_v9, -inf }
 0x880   :  { %844 = vmax.xlane.f32.xlu0 %v843_v13 }
 0x884   :  { %859 = vadd.xlane.f32.xlu0 %v858_v15 }
 0x90d   :  { %v845_v16 = vpop.xlane.xlu0 %844 }
 0x90e   :  { %v849_v17 = vsub.f32 %v788_v9, %v845_v16 }
 0x910   :  { %v851_v18 = vmul.f32 1.442695, %v849_v17 }
 0x911   :  { %v860_v20 = vpop.xlane.xlu0 %859 }
 0x912   :  { %3569 = vpow2.f32 %v851_v18 }
 0x913   :  { %3571 = vrcp.f32 %v860_v20 }
 0x91c   :  { %v3570_v21 = vpop.eup %3569 }
 0x91d   :  { %v3572_v22 = vpop.eup %3571  ;;  %v855_v23 = vsel %vm207_vm2, %v3570_v21, 0.0 }
 0x91e   :  { %v864_v24 = vmul.f32 %v3572_v22, %v3568_v14  ;;  %856 = vadd.xlane.f32.xlu0 %v855_v23 }
 0x920   :  { %v866_v26 = vpack.c.bf16 %v864_v24, %v864_v24 }
 0x922   :  { %3307 = vmatmul.mubr.msk.bf16.vlgmr.msra.gmra.mrb[24].mxu0 %vm207_vm2, %v866_v26 }
 0x923   :  { %3317 = vmatpush3.bf16.xpose.msra.mxu0 %v1023_v27  ;;  %3318 = vmatprep.mubr.msk.bf16.mxu0 %vm3664_vm1, %v3663_v19 }
 0x924   :  { %3328 = vmatprep.subr.bf16.mxu0 %v3663_v19 }
 0x934   :  { %867 = vrot.lane.b32.xlu0 %v3812_v39, %s3673_s18 }
 0x938   :  { %1015 = vrot.lane.b32.xlu0 %v3812_v39, %s4410_s20 }
 0x9ab   :  { %v857_v28 = vpop.xlane.xlu0 %856 }
 0x9ac   :  { %3573 = vrcp.f32 %v857_v28 }
 0x9af   :  { %v868_v29 = vpop.permute.xlu0 %867 }
 0x9b0   :  { %v873_v30 = vsel %vm332_vm3, %v868_v29, 0 }
 0x9b1   :  { %3299 = vmatpush3.bf16.msra.mxu1 %v873_v30  ;;  %v3034_v30 = vld [vmem:[%s4396_s6 + $0xc] sm:$0xf] }
 0x9b2   :  { %3310 = vmatprep.subr.bf16.mxu1 %v3663_v19 }
 0x9b3   :  { %v1016_v31 = vpop.permute.xlu0 %1015 }
 0x9b4   :  { %3319 = vmatmul.mubr.msk.bf16.vlgmr.msra.gmra.mrb[28].mxu0 %vm207_vm2, %v1016_v31  ;;  %v1242_v31 = vsel %vm332_vm3, %v3034_v30, 0 }
 0x9b5   :  { %3330 = vmatprep.mubr.msk.bf16.mxu0 %vm3664_vm1, %v3663_v19 }
 0x9b6   :  { %v3574_v32 = vpop.eup %3573 }
 0x9b7   :  { %v863_v33 = vmul.f32 %v3574_v32, %v3570_v21 }
 0x9b9   :  { %v865_v34 = vpack.c.bf16 %v863_v33, %v863_v33 }
 0x9bb   :  { %3301 = vmatmul.mubr.msk.bf16.vlgmr.msra.gmra.mrb[28].mxu1 %vm207_vm2, %v865_v34 }
 0x9bc   :  { %3312 = vmatprep.mubr.msk.bf16.mxu1 %vm3664_vm1, %v3663_v19  ;;  %3311 = vmatpush3.bf16.msra.mxu1 %v970_v41 }
 0x9bd   :  { %3322 = vmatprep.subr.bf16.mxu1 %v3663_v19 }
 0x9f5   :  { %v957_v35 = vpop.f32.mrb[24].mxu0 }
 0x9f6   :  { %v3308_v36 = vpop.f32.mrb[25].mxu0 }
 0x9f7   :  { %v960_v37 = vpop.f32.mrb[26].mxu0 }
 0x9f8   :  { %v3309_v38 = vpop.f32.mrb[27].mxu0 }
 0xa87   :  { %v1059_v43 = vpop.f32.mrb[28].mxu0 }
 0xa88   :  { %v1060_v44 = vadd.f32 %v1059_v43, %v3835_v59  ;;  %v3320_v45 = vpop.f32.mrb[29].mxu0 }
 0xa89   :  { %v1062_v46 = vpop.f32.mrb[30].mxu0 }
 0xa8a   :  { %v3321_v47 = vpop.f32.mrb[31].mxu0  ;;  %v1115_v48 = vsel %vm207_vm2, %v1060_v44, -inf  ;;  %v3036_v46 = vld [vmem:[%s4397_s7] ss:$0 sm:$0xff] }
 0xa8b   :  { %1116 = vmax.xlane.f32.xlu0 %v1115_v48 }
 0xa8e   :  { %v909_v50 = vpop.f32.mrb[28].mxu1 }
 0xa8f   :  { %v963_v51 = vpack.c.bf16 %v957_v35, %v909_v50  ;;  %v3302_v52 = vpop.f32.mrb[29].mxu1 }
 0xa90   :  { %v912_v53 = vpop.f32.mrb[30].mxu1 }
 0xa91   :  { %v3303_v55 = vpop.f32.mrb[31].mxu1  ;;  %3313 = vmatmul.mubr.msk.bf16.vlgmr.msra.gmra.mrb[32].mxu1 %vm207_vm2, %v963_v51 }
 0xa92   :  { %3323 = vmatpush3.bf16.xpose.msra.mxu1 %v1073_v54  ;;  %3324 = vmatprep.mubr.msk.bf16.mxu1 %vm3664_vm1, %v3663_v19 }
 0xa93   :  { %3334 = vmatprep.subr.bf16.mxu1 %v3663_v19 }
 0xa99   :  { %3325 = vmatmul.mubr.msk.bf16.vlgmr.msra.gmra.mrb[36].mxu1 %vm207_vm2, %v1066_v56 }
 0xa9a   :  { %3336 = vmatprep.mubr.msk.bf16.mxu1 %vm3664_vm1, %v3663_v19 }
 0xb18   :  { %v1117_v57 = vpop.xlane.xlu0 %1116 }
 0xb19   :  { %v1121_v58 = vsub.f32 %v1060_v44, %v1117_v57 }
 0xb1b   :  { %v1123_v61 = vmul.f32 1.442695, %v1121_v58 }
 0xb1d   :  { %3575 = vpow2.f32 %v1123_v61 }
 0xb27   :  { %v3576_v62 = vpop.eup %3575 }
 0xb28   :  { %v1127_v63 = vsel %vm207_vm2, %v3576_v62, 0.0 }
 0xb29   :  { %1128 = vadd.xlane.f32.xlu0 %v1127_v63 }
 0xb64   :  { %v1006_v0 = vpop.f32.mrb[32].mxu1 }
 0xb65   :  { %v1013_v2 = vadd.f32 %v1006_v0, %v3952_v1  ;;  %v3314_v4 = vpop.f32.mrb[33].mxu1 }
 0xb66   :  { %v1009_v7 = vpop.f32.mrb[34].mxu1  ;;  %v3533_v4 = vld [vmem:[%s4400_s10] sm:$0xff]  }
 0xb67   :  { %v1014_v8 = vadd.f32 %v1009_v7, %v3954_v6  ;;  %v3315_v9 = vpop.f32.mrb[35].mxu1  ;;  %v3534_v7 = vld [vmem:[%s4400_s10 + $0x8] sm:$0xff]  }
 0xb6c   :  { %v1109_v10 = vpop.f32.mrb[36].mxu1 }
 0xb6d   :  { %v1110_v11 = vadd.f32 %v1109_v10, %v3837_v60  ;;  %v3326_v12 = vpop.f32.mrb[37].mxu1 }
 0xb6e   :  { %v1112_v13 = vpop.f32.mrb[38].mxu1 }
 0xb6f   :  { %v3327_v14 = vpop.f32.mrb[39].mxu1  ;;  %v1118_v15 = vsel %vm207_vm2, %v1110_v11, -inf }
 0xb70   :  { %1119 = vmax.xlane.f32.xlu1 %v1118_v15  ;;  %v3037_v15 = vld [vmem:[%s4398_s8] ss:$0 sm:$0xff] }
 0xb81   :  { %1187 = vrot.lane.b32.xlu1 %v3814_v42, %s4408_s24 }
 0xbb6   :  { %v1129_v22 = vpop.xlane.xlu0 %1128 }
 0xbfd   :  { %v1120_v16 = vpop.xlane.xlu1 %1119 }
 0xbfe   :  { %v1122_v1 = vsub.f32 %v1110_v11, %v1120_v16 }
 0xc00   :  { %v1125_v17 = vmul.f32 1.442695, %v1122_v1 }
 0xc01   :  { %v1188_v18 = vpop.permute.xlu1 %1187 }
 0xc02   :  { %3577 = vpow2.f32 %v1125_v17  ;;  %v1193_v6 = vsel %vm332_vm3, %v1188_v18, 0 }
 0xc03   :  { %3335 = vmatpush3.bf16.msra.mxu1 %v1193_v6  ;;  %3579 = vrcp.f32 %v1129_v22  ;;  %v3038_v6 = vld [vmem:[%s4399_s9] ss:$0 sm:$0xff] }
 0xc04   :  { %3346 = vmatprep.subr.bf16.mxu1 %v3663_v19 }
 0xc0c   :  { %v3578_v20 = vpop.eup %3577 }
 0xc0d   :  { %v1130_v21 = vsel %vm207_vm2, %v3578_v20, 0.0  ;;  %v3580_v42 = vpop.eup %3579 }
 0xc0e   :  { %1131 = vadd.xlane.f32.xlu0 %v1130_v21  ;;  %v1135_v24 = vmul.f32 %v3580_v42, %v3576_v62 }
 0xc10   :  { %v1137_v27 = vpack.c.bf16 %v1135_v24, %v1135_v24  ;;  %v3536_v24 = vld [vmem:[%s4402_s12 + $0x8] sm:$0xff]  }
 0xc24   :  { %1139 = vrot.lane.b32.xlu0 %v3812_v39, %s4408_s24 }
 0xc9b   :  { %v1132_v23 = vpop.xlane.xlu0 %1131 }
 0xc9c   :  { %3581 = vrcp.f32 %v1132_v23  ;;  %v3535_v23 = vld [vmem:[%s4402_s12] sm:$0xff]  }
 0xc9f   :  { %v1140_v25 = vpop.permute.xlu0 %1139 }
 0xca0   :  { %v1145_v26 = vsel %vm332_vm3, %v1140_v25, 0  ;;  %v3537_v25 = vld [vmem:[%s4402_s12 + $0x10] sm:$0xff]  }
 0xca1   :  { %3329 = vmatpush3.bf16.msra.mxu0 %v1145_v26  ;;  %v3538_v26 = vld [vmem:[%s4402_s12 + $0x18] sm:$0xff]  }
 0xca2   :  { %3340 = vmatprep.subr.bf16.mxu0 %v3663_v19 }
 0xca4   :  { %3331 = vmatmul.mubr.msk.bf16.vlgmr.msra.gmra.mrb[32].mxu0 %vm207_vm2, %v1137_v27  ;;  %v3039_v27 = vld [vmem:[%s4401_s11] ss:$0 sm:$0xff] }
 0xca5   :  { %3342 = vmatprep.mubr.msk.bf16.mxu0 %vm3664_vm1, %v3663_v19  ;;  %3341 = vmatpush3.bf16.msra.mxu0 %v1242_v31 }
 0xca6   :  { %v3582_v28 = vpop.eup %3581  ;;  %3354 = vmatprep.subr.bf16.mxu0 %v3663_v19 }
 0xca7   :  { %v1136_v39 = vmul.f32 %v3582_v28, %v3578_v20 }
 0xca9   :  { %v1138_v29 = vpack.c.bf16 %v1136_v39, %v1136_v39 }
 0xcab   :  { %3337 = vmatmul.mubr.msk.bf16.vlgmr.msra.gmra.mrb[40].mxu1 %vm207_vm2, %v1138_v29 }
 0xcac   :  { %3350 = vmatprep.mubr.msk.bf16.mxu1 %vm3664_vm1, %v3663_v19  ;;  %3347 = vmatpush3.bf16.msra.mxu1 %v3533_v4 }
 0xcad   :  { %3348 = vmatprep.subr.bf16.mxu1 %v3663_v19 }
 0xcb0   :  { %3349 = vmatpush3.bf16.msra.mxu1 %v3534_v7 }
 0xcb1   :  { %3366 = vmatprep.subr.bf16.mxu1 %v3663_v19 }
 0xd77   :  { %v1181_v32 = vpop.f32.mrb[32].mxu0 }
 0xd78   :  { %v3332_v33 = vpop.f32.mrb[33].mxu0 }
 0xd79   :  { %v1184_v34 = vpop.f32.mrb[34].mxu0 }
 0xd7a   :  { %v3333_v35 = vpop.f32.mrb[35].mxu0 }
 0xd7e   :  { %v1229_v36 = vpop.f32.mrb[40].mxu1 }
 0xd7f   :  { %v1235_v37 = vpack.c.bf16 %v1229_v36, %v1181_v32  ;;  %v3338_v38 = vpop.f32.mrb[41].mxu1 }
 0xd80   :  { %v1232_v40 = vpop.f32.mrb[42].mxu1 }
 0xd81   :  { %v3339_v41 = vpop.f32.mrb[43].mxu1  ;;  %3343 = vmatmul.mubr.msk.bf16.vlgmr.msra.gmra.mrb[36].mxu0 %vm207_vm2, %v1235_v37 }
 0xd82   :  { %3362 = vmatprep.mubr.msk.bf16.mxu0 %vm3664_vm1, %v3663_v19  ;;  %3355 = vmatpush3.bf16.msra.mxu0 %v3535_v23 }
 0xd83   :  { %3356 = vmatprep.subr.bf16.mxu0 %v3663_v19 }
 0xd86   :  { %3357 = vmatpush3.bf16.msra.mxu0 %v3536_v24 }
 0xd87   :  { %3358 = vmatprep.subr.bf16.mxu0 %v3663_v19 }
 0xd8a   :  { %3359 = vmatpush3.bf16.msra.mxu0 %v3537_v25 }
 0xd8b   :  { %3360 = vmatprep.subr.bf16.mxu0 %v3663_v19 }
 0xd8e   :  { %3361 = vmatpush3.bf16.msra.mxu0 %v3538_v26 }
 0xd8f   :  { %3380 = vmatprep.subr.bf16.mxu0 %v3663_v19 }
 0xe54   :  { %v1278_v43 = vpop.f32.mrb[36].mxu0 }
 0xe55   :  { %v1285_v44 = vadd.f32 %v1278_v43, %v1013_v2  ;;  %v3344_v45 = vpop.f32.mrb[37].mxu0 }
 0xe56   :  { %v1281_v47 = vpop.f32.mrb[38].mxu0 }
 0xe57   :  { %v1287_v48 = vadd.f32 %v1285_v44, %v3774_v3  ;;  %v1286_v49 = vadd.f32 %v1281_v47, %v1014_v8  ;;  %v3345_v50 = vpop.f32.mrb[39].mxu0 }
 0xe59   :  { %v4024_v51 = vadd.f32 %v3036_v46, %v1287_v48  ;;  %v1288_v52 = vadd.f32 %v1286_v49, %v3779_v5 }
 0xe5b   :  { %v4027_v53 = vadd.f32 %v3036_v46, %v1288_v52  ;;  %v1300_v54 = vsel %vm87_vm0, %v4024_v51, 0.0 }
 0xe5c   :  { %1301 = vadd.xlane.f32.xlu1 %v1300_v54 }
 0xe5d   :  { %v1303_v55 = vsel %vm87_vm0, %v4027_v53, 0.0 }
 0xe5e   :  { %1304 = vadd.xlane.f32.xlu0 %v1303_v55 }
 0xee9   :  { %v1302_v56 = vpop.xlane.xlu1 %1301 }
 0xeea   :  { %v1306_v57 = vmul.f32 0.03125, %v1302_v56 }
 0xeeb   :  { %v1305_v58 = vpop.xlane.xlu0 %1304 }
 0xeec   :  { %v1308_v3 = vsub.f32 %v4024_v51, %v1306_v57  ;;  %v1307_v61 = vmul.f32 0.03125, %v1305_v58  ;;  %v3048_v57 = vld [vmem:[%s4403_s13] ss:$0 sm:$0xff] }
 0xeee   :  { %v1309_v62 = vsub.f32 %v4027_v53, %v1307_v61  ;;  %v1310_v63 = vmul.f32 %v1308_v3, %v1308_v3 }
 0xef0   :  { %v1312_v5 = vsel %vm87_vm0, %v1310_v63, 0.0  ;;  %v1311_v0 = vmul.f32 %v1309_v62, %v1309_v62 }
 0xef1   :  { %1313 = vadd.xlane.f32.xlu0 %v1312_v5 }
 0xef2   :  { %v1315_v2 = vsel %vm87_vm0, %v1311_v0, 0.0 }
 0xef3   :  { %1316 = vadd.xlane.f32.xlu1 %v1315_v2 }
 0xf7e   :  { %v1314_v8 = vpop.xlane.xlu0 %1313 }
 0xf7f   :  { %v1318_v9 = vmul.f32 0.03125, %v1314_v8 }
 0xf80   :  { %v1317_v10 = vpop.xlane.xlu1 %1316 }
 0xf81   :  { %v1320_v11 = vadd.f32 1e-05, %v1318_v9  ;;  %v1319_v12 = vmul.f32 0.03125, %v1317_v10 }
 0xf83   :  { %3583 = vrsqrt.f32 %v1320_v11  ;;  %v1321_v13 = vadd.f32 1e-05, %v1319_v12 }
 0xf85   :  { %3585 = vrsqrt.f32 %v1321_v13 }
 0xf8d   :  { %v3584_v14 = vpop.eup %3583 }
 0xf8e   :  { %v1324_v16 = vmul.f32 %v3584_v14, %v1308_v3 }
 0xf8f   :  { %v3586_v1 = vpop.eup %3585 }
 0xf90   :  { %v1332_v17 = vmul.f32 %v3037_v15, %v1324_v16  ;;  %v1325_v18 = vmul.f32 %v3586_v1, %v1309_v62  ;;  %v3540_v16 = vld [vmem:[%s4395_s5 + $0x18] sm:$0xff]  }
 0xf92   :  { %v1333_v20 = vmul.f32 %v3037_v15, %v1325_v18  ;;  %v1340_v21 = vadd.f32 %v3038_v6, %v1332_v17  ;;  %v3539_v15 = vld [vmem:[%s4395_s5 + $0x10] sm:$0xff]  }
 0xf94   :  { %v1341_v22 = vadd.f32 %v3038_v6, %v1333_v20 }
 0xf96   :  { %v1342_v42 = vpack.c.bf16 %v1341_v22, %v1340_v21 }
 0xf98   :  { %3351 = vmatmul.mubr.msk.bf16.vlgmr.msra.gmra.mrb[44].mxu1 %vm87_vm0, %v1342_v42  ;;  %v3051_v42 = vld [vmem:[%s4393_s3 + $0x1] ss:$0 sm:$0xff] }
 0xf99   :  { %3370 = vmatprep.mubr.msk.bf16.mxu1 %vm3664_vm1, %v3663_v19  ;;  %3367 = vmatpush3.bf16.msra.mxu1 %v3539_v15 }
 0xf9a   :  { %3368 = vmatprep.subr.bf16.mxu1 %v3663_v19 }
 0xf9d   :  { %3369 = vmatpush3.bf16.msra.mxu1 %v3540_v16 }
 0xf9e   :  { %3374 = vmatprep.subr.bf16.mxu1 %v3663_v19 }
0x106b   :  { %v1403_v28 = vpop.f32.mrb[44].mxu1 }
0x106c   :  { %v1404_v39 = vadd.f32 %v3039_v27, %v1403_v28  ;;  %v3352_v29 = vpop.f32.mrb[45].mxu1 }
0x106d   :  { %v1406_v30 = vpop.f32.mrb[46].mxu1 }
0x106e   :  { %v1412_v31 = vmul.f32 0.044715, %v1404_v39  ;;  %v1407_v32 = vadd.f32 %v3039_v27, %v1406_v30  ;;  %v3353_v33 = vpop.f32.mrb[47].mxu1  ;;  %v1410_v48 = vmul.f32 0.5, %v1404_v39  ;;  %v3052_v27 = vld [vmem:[%s4394_s4 + $0x1] ss:$0 sm:$0xff] }
0x1070   :  { %v1414_v34 = vmul.f32 %v1412_v31, %v1404_v39  ;;  %v1413_v35 = vmul.f32 0.044715, %v1407_v32  ;;  %v1411_v49 = vmul.f32 0.5, %v1407_v32 }
0x1072   :  { %v1416_v36 = vmul.f32 %v1414_v34, %v1404_v39  ;;  %v1415_v37 = vmul.f32 %v1413_v35, %v1407_v32 }
0x1074   :  { %v1418_v38 = vadd.f32 %v1416_v36, %v1404_v39  ;;  %v1417_v40 = vmul.f32 %v1415_v37, %v1407_v32 }
0x1076   :  { %v1420_v41 = vmul.f32 0.7978846, %v1418_v38  ;;  %v1419_v43 = vadd.f32 %v1417_v40, %v1407_v32 }
0x1078   :  { %3587 = vtanh.f32 %v1420_v41  ;;  %v1421_v44 = vmul.f32 0.7978846, %v1419_v43 }
0x107a   :  { %3589 = vtanh.f32 %v1421_v44 }
0x1082   :  { %v3588_v45 = vpop.eup %3587 }
0x1083   :  { %v1424_v46 = vadd.f32 1.0, %v3588_v45 }
0x1084   :  { %v3590_v47 = vpop.eup %3589 }
0x1085   :  { %v1425_v50 = vadd.f32 1.0, %v3590_v47  ;;  %v1426_v52 = vmul.f32 %v1424_v46, %v1410_v48 }
0x1087   :  { %v1427_v54 = vmul.f32 %v1425_v50, %v1411_v49 }
0x1089   :  { %v1428_v55 = vpack.c.bf16 %v1427_v54, %v1426_v52 }
0x108b   :  { %3363 = vmatmul.mubr.msk.bf16.vlgmr.msra.gmra.mrb[40].mxu0 %vm1461_vm4, %v1428_v55 }
0x108c   :  { %3382 = vmatprep.mubr.msk.bf16.mxu0 %vm3664_vm1, %v3663_v19 }
0x115e   :  { %v1499_v56 = vpop.f32.mrb[40].mxu0 }
0x115f   :  { %v1506_v58 = vadd.f32 %v1499_v56, %v4024_v51  ;;  %v3364_v3 = vpop.f32.mrb[41].mxu0 }
0x1160   :  { %v1502_v61 = vpop.f32.mrb[42].mxu0 }
0x1161   :  { %v4080_v62 = vadd.f32 %v3048_v57, %v1506_v58  ;;  %v1507_v63 = vadd.f32 %v1502_v61, %v4027_v53  ;;  %v3365_v5 = vpop.f32.mrb[43].mxu0 }
0x1163   :  { %v4083_v0 = vadd.f32 %v3048_v57, %v1507_v63  ;;  %v1521_v2 = vsel %vm87_vm0, %v4080_v62, 0.0 }
0x1164   :  { %1522 = vadd.xlane.f32.xlu0 %v1521_v2 }
0x1165   :  { %v1524_v4 = vsel %vm87_vm0, %v4083_v0, 0.0 }
0x1166   :  { %1525 = vadd.xlane.f32.xlu1 %v1524_v4 }
0x11f1   :  { %v1523_v7 = vpop.xlane.xlu0 %1522 }
0x11f2   :  { %v1527_v8 = vmul.f32 0.03125, %v1523_v7 }
0x11f3   :  { %v1526_v51 = vpop.xlane.xlu1 %1525 }
0x11f4   :  { %v1529_v9 = vsub.f32 %v4080_v62, %v1527_v8  ;;  %v1528_v10 = vmul.f32 0.03125, %v1526_v51 }
0x11f6   :  { %v1530_v11 = vsub.f32 %v4083_v0, %v1528_v10  ;;  %v1531_v53 = vmul.f32 %v1529_v9, %v1529_v9 }
0x11f8   :  { %v1533_v12 = vsel %vm87_vm0, %v1531_v53, 0.0  ;;  %v1532_v13 = vmul.f32 %v1530_v11, %v1530_v11 }
0x11f9   :  { %1534 = vadd.xlane.f32.xlu0 %v1533_v12 }
0x11fa   :  { %v1536_v14 = vsel %vm87_vm0, %v1532_v13, 0.0 }
0x11fb   :  { %1537 = vadd.xlane.f32.xlu1 %v1536_v14 }
0x1286   :  { %v1535_v1 = vpop.xlane.xlu0 %1534 }
0x1287   :  { %v1539_v17 = vmul.f32 0.03125, %v1535_v1 }
0x1288   :  { %v1538_v18 = vpop.xlane.xlu1 %1537 }
0x1289   :  { %v1541_v6 = vadd.f32 1e-05, %v1539_v17  ;;  %v1540_v20 = vmul.f32 0.03125, %v1538_v18 }
0x128b   :  { %3591 = vrsqrt.f32 %v1541_v6  ;;  %v1542_v21 = vadd.f32 1e-05, %v1540_v20 }
0x128d   :  { %3593 = vrsqrt.f32 %v1542_v21 }
0x1295   :  { %v3592_v22 = vpop.eup %3591 }
0x1296   :  { %v1545_v23 = vmul.f32 %v3592_v22, %v1529_v9 }
0x1297   :  { %v3594_v24 = vpop.eup %3593 }
0x1298   :  { %v1553_v25 = vmul.f32 %v3051_v42, %v1545_v23  ;;  %v1546_v26 = vmul.f32 %v3594_v24, %v1530_v11 }
0x129a   :  { %v1554_v28 = vmul.f32 %v3051_v42, %v1546_v26  ;;  %v1561_v39 = vadd.f32 %v3052_v27, %v1553_v25 }
0x129c   :  { %v1562_v29 = vadd.f32 %v3052_v27, %v1554_v28 }
0x129e   :  { %v1563_v30 = vpack.c.bf16 %v1562_v29, %v1561_v39 }
0x12a0   :  { %3371 = vmatmul.mubr.msk.bf16.vlgmr.msra.gmra.mrb[48].mxu1 %vm87_vm0, %v1563_v30 }
0x12a1   :  { %3376 = vmatprep.mubr.msk.bf16.mxu1 %vm3664_vm1, %v3663_v19 }
0x1373   :  { %v1618_v31 = vpop.f32.mrb[48].mxu1 }
0x1374   :  { %v4110_v32 = vpack.c.bf16 %v1618_v31, %v1618_v31  ;;  %v3372_v33 = vpop.f32.mrb[49].mxu1 }
0x1375   :  { %v1621_v34 = vpop.f32.mrb[50].mxu1 }
0x1376   :  { %v4112_v35 = vpack.c.bf16 %v1621_v34, %v1621_v34  ;;  %1628 = vrot.lane.b32.xlu0 %v4110_v32, %s3665_s22  ;;  %v3373_v36 = vpop.f32.mrb[51].mxu1 }
0x1378   :  { %1677 = vrot.lane.b32.xlu1 %v4112_v35, %s3665_s22 }
0x13e8   :  { %v1629_v37 = vpop.permute.xlu0 %1628 }
0x13e9   :  { %v1634_v38 = vsel %vm207_vm2, %v1629_v37, 0 }
0x13ea   :  { %3375 = vmatpush3.bf16.xpose.msra.mxu1 %v1634_v38  ;;  %v1678_v40 = vpop.permute.xlu1 %1677 }
0x13eb   :  { %v1683_v41 = vsel %vm207_vm2, %v1678_v40, 0  ;;  %3386 = vmatprep.subr.bf16.mxu1 %v3663_v19 }
0x13ec   :  { %3381 = vmatpush3.bf16.xpose.msra.mxu0 %v1683_v41 }
0x13ed   :  { %3392 = vmatprep.subr.bf16.mxu0 %v3663_v19 }
0x13f1   :  { %3377 = vmatmul.mubr.msk.bf16.vlgmr.msra.gmra.mrb[52].mxu1 %vm207_vm2, %v4110_v32 }
0x13f2   :  { %3388 = vmatprep.mubr.msk.bf16.mxu1 %vm3664_vm1, %v3663_v19 }
0x13f3   :  { %3383 = vmatmul.mubr.msk.bf16.vlgmr.msra.gmra.mrb[44].mxu0 %vm207_vm2, %v4112_v35 }
0x13f4   :  { %3394 = vmatprep.mubr.msk.bf16.mxu0 %vm3664_vm1, %v3663_v19 }
0x14c4   :  { %v1670_v43 = vpop.f32.mrb[52].mxu1 }
0x14c5   :  { %v1671_v44 = vadd.f32 %v1670_v43, %v3835_v59  ;;  %v3378_v45 = vpop.f32.mrb[53].mxu1 }
0x14c6   :  { %v1673_v46 = vpop.f32.mrb[54].mxu1  ;;  %v1719_v47 = vpop.f32.mrb[44].mxu0 }
0x14c7   :  { %v1720_v48 = vadd.f32 %v1719_v47, %v3837_v60  ;;  %v3379_v49 = vpop.f32.mrb[55].mxu1  ;;  %v3384_v50 = vpop.f32.mrb[45].mxu0  ;;  %v1725_v52 = vsel %vm207_vm2, %v1671_v44, -inf }
0x14c8   :  { %v1722_v54 = vpop.f32.mrb[46].mxu0  ;;  %1726 = vmax.xlane.f32.xlu1 %v1725_v52 }
0x14c9   :  { %v3385_v55 = vpop.f32.mrb[47].mxu0  ;;  %v1728_v56 = vsel %vm207_vm2, %v1720_v48, -inf }
0x14ca   :  { %1729 = vmax.xlane.f32.xlu0 %v1728_v56 }
0x14d9   :  { %1797 = vrot.lane.b32.xlu1 %v4112_v35, %s3667_s2 }
0x14dd   :  { %1850 = vrot.lane.b32.xlu1 %v4110_v32, %s3668_s25 }
0x1555   :  { %v1727_v57 = vpop.xlane.xlu1 %1726 }
0x1556   :  { %v1731_v58 = vsub.f32 %v1671_v44, %v1727_v57 }
0x1557   :  { %v1730_v3 = vpop.xlane.xlu0 %1729 }
0x1558   :  { %v1733_v61 = vmul.f32 1.442695, %v1731_v58  ;;  %v1732_v63 = vsub.f32 %v1720_v48, %v1730_v3 }
0x1559   :  { %v1798_v5 = vpop.permute.xlu1 %1797 }
0x155a   :  { %3595 = vpow2.f32 %v1733_v61  ;;  %v1735_v2 = vmul.f32 1.442695, %v1732_v63  ;;  %v1803_v4 = vsel %vm332_vm3, %v1798_v5, 0 }
0x155b   :  { %3393 = vmatpush3.bf16.msra.mxu0 %v1803_v4 }
0x155c   :  { %3597 = vpow2.f32 %v1735_v2  ;;  %3404 = vmatprep.subr.bf16.mxu0 %v3663_v19 }
0x155d   :  { %v1851_v10 = vpop.permute.xlu1 %1850 }
0x155e   :  { %v1856_v6 = vsel %vm207_vm2, %v1851_v10, 0 }
0x1564   :  { %v3596_v7 = vpop.eup %3595 }
0x1565   :  { %v1737_v8 = vsel %vm207_vm2, %v3596_v7, 0.0 }
0x1566   :  { %v3598_v51 = vpop.eup %3597  ;;  %1738 = vadd.xlane.f32.xlu0 %v1737_v8  ;;  %v3069_v8 = vld [vmem:[%s4396_s6 + $0x14] sm:$0xf] }
0x1567   :  { %v1740_v9 = vsel %vm207_vm2, %v3598_v51, 0.0  ;;  %v2075_v10 = vsel %vm332_vm3, %v3069_v8, 0 }
0x1568   :  { %1741 = vadd.xlane.f32.xlu1 %v1740_v9 }
0x1579   :  { %1900 = vrot.lane.b32.xlu1 %v4112_v35, %s3668_s25  ;;  %s4414_s25 = smov 104  }
0x157c   :  { %1749 = vrot.lane.b32.xlu0 %v4110_v32, %s3667_s2 }
0x157d   :  { %1898 = vrot.lane.b32.xlu1 %v4112_v35, %s3669_s26 }
0x1580   :  { %1848 = vrot.lane.b32.xlu0 %v4110_v32, %s3669_s26 }
0x15f3   :  { %v1739_v11 = vpop.xlane.xlu0 %1738 }
0x15f4   :  { %3599 = vrcp.f32 %v1739_v11 }
0x15f5   :  { %v1742_v53 = vpop.xlane.xlu1 %1741 }
0x15f6   :  { %3601 = vrcp.f32 %v1742_v53  ;;  %v3064_v53 = vld [vmem:[%s4396_s6 + $0x10] sm:$0xf] }
0x15f7   :  { %v1750_v12 = vpop.permute.xlu0 %1749 }
0x15f8   :  { %v1755_v13 = vsel %vm332_vm3, %v1750_v12, 0 }
0x15f9   :  { %3387 = vmatpush3.bf16.msra.mxu1 %v1755_v13  ;;  %v1901_v18 = vpop.permute.xlu1 %1900 }
0x15fa   :  { %3398 = vmatprep.subr.bf16.mxu1 %v3663_v19  ;;  %v1906_v21 = vsel %vm207_vm2, %v1901_v18, 0 }
0x15fb   :  { %v1849_v22 = vpop.permute.xlu0 %1848 }
0x15fd   :  { %v1899_v42 = vpop.permute.xlu1 %1898 }
0x15fe   :  { %v3600_v14 = vpop.eup %3599 }
0x15ff   :  { %v1745_v15 = vmul.f32 %v3600_v14, %v3596_v7  ;;  %v2122_v14 = vsel %vm332_vm3, %v3064_v53, 0 }
0x1600   :  { %v3602_v16 = vpop.eup %3601 }
0x1601   :  { %v1746_v1 = vmul.f32 %v3602_v16, %v3598_v51  ;;  %v1747_v17 = vpack.c.bf16 %v1745_v15, %v1745_v15 }
0x1603   :  { %3389 = vmatmul.mubr.msk.bf16.vlgmr.msra.gmra.mrb[56].mxu1 %vm207_vm2, %v1747_v17  ;;  %v1748_v20 = vpack.c.bf16 %v1746_v1, %v1746_v1 }
0x1604   :  { %3399 = vmatpush3.bf16.xpose.msra.mxu1 %v1856_v6  ;;  %3400 = vmatprep.mubr.msk.bf16.mxu1 %vm3664_vm1, %v3663_v19 }
0x1605   :  { %3395 = vmatmul.mubr.msk.bf16.vlgmr.msra.gmra.mrb[48].mxu0 %vm207_vm2, %v1748_v20  ;;  %3410 = vmatprep.subr.bf16.mxu1 %v3663_v19 }
0x1606   :  { %3405 = vmatpush3.bf16.xpose.msra.mxu0 %v1906_v21  ;;  %3406 = vmatprep.mubr.msk.bf16.mxu0 %vm3664_vm1, %v3663_v19 }
0x1607   :  { %3416 = vmatprep.subr.bf16.mxu0 %v3663_v19 }
0x160b   :  { %3401 = vmatmul.mubr.msk.bf16.vlgmr.msra.gmra.mrb[60].mxu1 %vm207_vm2, %v1849_v22 }
0x160c   :  { %3412 = vmatprep.mubr.msk.bf16.mxu1 %vm3664_vm1, %v3663_v19 }
0x160d   :  { %3407 = vmatmul.mubr.msk.bf16.vlgmr.msra.gmra.mrb[52].mxu0 %vm207_vm2, %v1899_v42 }
0x160e   :  { %3418 = vmatprep.mubr.msk.bf16.mxu0 %vm3664_vm1, %v3663_v19 }
0x16d6   :  { %v4168_v23 = vpop.f32.mrb[56].mxu1 }
0x16d7   :  { %v3390_v24 = vpop.f32.mrb[57].mxu1 }
0x16d8   :  { %v1794_v25 = vpop.f32.mrb[58].mxu1  ;;  %v4170_v26 = vpop.f32.mrb[48].mxu0 }
0x16d9   :  { %v1845_v27 = vpack.c.bf16 %v4170_v26, %v4168_v23  ;;  %v3391_v28 = vpop.f32.mrb[59].mxu1  ;;  %v3396_v39 = vpop.f32.mrb[49].mxu0 }
0x16da   :  { %v1842_v29 = vpop.f32.mrb[50].mxu0 }
0x16db   :  { %v3397_v30 = vpop.f32.mrb[51].mxu0 }
0x16de   :  { %v1892_v31 = vpop.f32.mrb[60].mxu1 }
0x16df   :  { %v1893_v33 = vadd.f32 %v1892_v31, %v3835_v59  ;;  %v3402_v34 = vpop.f32.mrb[61].mxu1 }
0x16e0   :  { %v1895_v36 = vpop.f32.mrb[62].mxu1  ;;  %v1942_v37 = vpop.f32.mrb[52].mxu0 }
0x16e1   :  { %v1943_v38 = vadd.f32 %v1942_v37, %v3837_v60  ;;  %v3403_v40 = vpop.f32.mrb[63].mxu1  ;;  %v3408_v41 = vpop.f32.mrb[53].mxu0  ;;  %v1948_v43 = vsel %vm207_vm2, %v1893_v33, -inf }
0x16e2   :  { %v1945_v44 = vpop.f32.mrb[54].mxu0  ;;  %1949 = vmax.xlane.f32.xlu0 %v1948_v43 }
0x16e3   :  { %v3409_v45 = vpop.f32.mrb[55].mxu0  ;;  %v1951_v46 = vsel %vm207_vm2, %v1943_v38, -inf }
0x16e4   :  { %1952 = vmax.xlane.f32.xlu1 %v1951_v46 }
0x16f5   :  { %2020 = vrot.lane.b32.xlu1 %v4112_v35, %s3670_s27 }
0x16f9   :  { %2167 = vrot.lane.b32.xlu1 %v4110_v32, %s3671_s28 }
0x16fd   :  { %2217 = vrot.lane.b32.xlu1 %v4112_v35, %s3671_s28  ;;  %s4415_s28 = smov 40  }
0x1701   :  { %2215 = vrot.lane.b32.xlu1 %v4112_v35, %s3672_s29 }
0x176f   :  { %v1950_v47 = vpop.xlane.xlu0 %1949 }
0x1770   :  { %v1954_v48 = vsub.f32 %v1893_v33, %v1950_v47 }
0x1771   :  { %v1953_v49 = vpop.xlane.xlu1 %1952 }
0x1772   :  { %v1956_v50 = vmul.f32 1.442695, %v1954_v48  ;;  %v1955_v52 = vsub.f32 %v1943_v38, %v1953_v49 }
0x1774   :  { %3603 = vpow2.f32 %v1956_v50  ;;  %v1958_v54 = vmul.f32 1.442695, %v1955_v52 }
0x1775   :  { %v2021_v55 = vpop.permute.xlu1 %2020 }
0x1776   :  { %3605 = vpow2.f32 %v1958_v54  ;;  %v2026_v56 = vsel %vm332_vm3, %v2021_v55, 0 }
0x1777   :  { %3417 = vmatpush3.bf16.msra.mxu0 %v2026_v56 }
0x1778   :  { %3428 = vmatprep.subr.bf16.mxu0 %v3663_v19 }
0x1779   :  { %v2168_v15 = vpop.permute.xlu1 %2167 }
0x177a   :  { %v2173_v25 = vsel %vm207_vm2, %v2168_v15, 0 }
0x177d   :  { %v2218_v16 = vpop.permute.xlu1 %2217 }
0x177e   :  { %v3604_v57 = vpop.eup %3603  ;;  %v2223_v1 = vsel %vm207_vm2, %v2218_v16, 0 }
0x177f   :  { %v1960_v58 = vsel %vm207_vm2, %v3604_v57, 0.0 }
0x1780   :  { %v3606_v3 = vpop.eup %3605  ;;  %1961 = vadd.xlane.f32.xlu0 %v1960_v58 }
0x1781   :  { %v1963_v61 = vsel %vm207_vm2, %v3606_v3, 0.0  ;;  %v2216_v17 = vpop.permute.xlu1 %2215 }
0x1784   :  { %1964 = vadd.xlane.f32.xlu0 %v1963_v61 }
0x179a   :  { %1972 = vrot.lane.b32.xlu0 %v4110_v32, %s3670_s27 }
0x179e   :  { %2165 = vrot.lane.b32.xlu0 %v4110_v32, %s3672_s29  ;;  %s3677_s29 = smov [#allocation2]  }
0x180d   :  { %v1962_v63 = vpop.xlane.xlu0 %1961 }
0x180e   :  { %3607 = vrcp.f32 %v1962_v63 }
0x1811   :  { %v1965_v5 = vpop.xlane.xlu0 %1964 }
0x1812   :  { %3609 = vrcp.f32 %v1965_v5 }
0x1815   :  { %v1973_v2 = vpop.permute.xlu0 %1972 }
0x1816   :  { %v1978_v4 = vsel %vm332_vm3, %v1973_v2, 0 }
0x1817   :  { %3411 = vmatpush3.bf16.msra.mxu1 %v1978_v4 }
0x1818   :  { %v3608_v7 = vpop.eup %3607  ;;  %3422 = vmatprep.subr.bf16.mxu1 %v3663_v19 }
0x1819   :  { %v1968_v51 = vmul.f32 %v3608_v7, %v3604_v57  ;;  %v2166_v39 = vpop.permute.xlu0 %2165 }
0x181b   :  { %v1970_v9 = vpack.c.bf16 %v1968_v51, %v1968_v51 }
0x181c   :  { %v3610_v11 = vpop.eup %3609 }
0x181d   :  { %v1969_v12 = vmul.f32 %v3610_v11, %v3606_v3  ;;  %3413 = vmatmul.mubr.msk.bf16.vlgmr.msra.gmra.mrb[64].mxu1 %vm207_vm2, %v1970_v9 }
0x181e   :  { %3423 = vmatpush3.bf16.msra.mxu1 %v2075_v10  ;;  %3424 = vmatprep.mubr.msk.bf16.mxu1 %vm3664_vm1, %v3663_v19 }
0x181f   :  { %v1971_v13 = vpack.c.bf16 %v1969_v12, %v1969_v12  ;;  %3434 = vmatprep.subr.bf16.mxu1 %v3663_v19 }
0x1821   :  { %3419 = vmatmul.mubr.msk.bf16.vlgmr.msra.gmra.mrb[56].mxu0 %vm207_vm2, %v1971_v13 }
0x1822   :  { %3429 = vmatpush3.bf16.msra.mxu0 %v2122_v14  ;;  %3430 = vmatprep.mubr.msk.bf16.mxu0 %vm3664_vm1, %v3663_v19 }
0x1823   :  { %3440 = vmatprep.subr.bf16.mxu0 %v3663_v19 }
0x1829   :  { %3431 = vmatmul.mubr.msk.bf16.vlgmr.msra.gmra.mrb[60].mxu0 %vm207_vm2, %v1845_v27 }
0x182a   :  { %3442 = vmatprep.mubr.msk.bf16.mxu0 %vm3664_vm1, %v3663_v19 }
0x182b   :  { %3441 = vmatpush3.bf16.xpose.msra.mxu0 %v2223_v1 }
0x182c   :  { %3452 = vmatprep.subr.bf16.mxu0 %v3663_v19 }
0x1832   :  { %3443 = vmatmul.mubr.msk.bf16.vlgmr.msra.gmra.mrb[64].mxu0 %vm207_vm2, %v2216_v17 }
0x1833   :  { %3454 = vmatprep.mubr.msk.bf16.mxu0 %vm3664_vm1, %v3663_v19 }
0x18f0   :  { %v2014_v18 = vpop.f32.mrb[64].mxu1 }
0x18f1   :  { %v3414_v6 = vpop.f32.mrb[65].mxu1 }
0x18f2   :  { %v2017_v20 = vpop.f32.mrb[66].mxu1 }
0x18f3   :  { %v3415_v21 = vpop.f32.mrb[67].mxu1 }
0x18f4   :  { %v2062_v22 = vpop.f32.mrb[56].mxu0 }
0x18f5   :  { %v2068_v42 = vpack.c.bf16 %v2062_v22, %v2014_v18  ;;  %v3420_v23 = vpop.f32.mrb[57].mxu0 }
0x18f6   :  { %v2065_v24 = vpop.f32.mrb[58].mxu0 }
0x18f7   :  { %v3421_v26 = vpop.f32.mrb[59].mxu0  ;;  %3425 = vmatmul.mubr.msk.bf16.vlgmr.msra.gmra.mrb[68].mxu1 %vm207_vm2, %v2068_v42  ;;  %v3076_v42 = vld [vmem:[%s4396_s6 + $0x18] sm:$0xf] }
0x18f8   :  { %3435 = vmatpush3.bf16.xpose.msra.mxu1 %v2173_v25  ;;  %3436 = vmatprep.mubr.msk.bf16.mxu1 %vm3664_vm1, %v3663_v19  ;;  %v2392_v23 = vsel %vm332_vm3, %v3076_v42, 0 }
0x18f9   :  { %3446 = vmatprep.subr.bf16.mxu1 %v3663_v19 }
0x18fc   :  { %v2158_v27 = vpop.f32.mrb[60].mxu0 }
0x18fd   :  { %v3432_v28 = vpop.f32.mrb[61].mxu0 }
0x18fe   :  { %v2161_v29 = vpop.f32.mrb[62].mxu0 }
0x18ff   :  { %v3433_v30 = vpop.f32.mrb[63].mxu0  ;;  %3437 = vmatmul.mubr.msk.bf16.vlgmr.msra.gmra.mrb[72].mxu1 %vm207_vm2, %v2166_v39 }
0x1900   :  { %3448 = vmatprep.mubr.msk.bf16.mxu1 %vm3664_vm1, %v3663_v19 }
0x1905   :  { %v2259_v31 = vpop.f32.mrb[64].mxu0 }
0x1906   :  { %v2260_v33 = vadd.f32 %v2259_v31, %v3837_v60  ;;  %v3444_v34 = vpop.f32.mrb[65].mxu0 }
0x1907   :  { %v2262_v36 = vpop.f32.mrb[66].mxu0 }
0x1908   :  { %v3445_v37 = vpop.f32.mrb[67].mxu0  ;;  %v2268_v38 = vsel %vm207_vm2, %v2260_v33, -inf }
0x1909   :  { %2269 = vmax.xlane.f32.xlu1 %v2268_v38 }
0x191a   :  { %2337 = vrot.lane.b32.xlu1 %v4112_v35, %s3673_s18 }
0x191e   :  { %2439 = vrot.lane.b32.xlu1 %v4110_v32, %s3674_s19 }
0x1922   :  { %2489 = vrot.lane.b32.xlu1 %v4112_v35, %s3674_s19 }
0x1926   :  { %2487 = vrot.lane.b32.xlu1 %v4112_v35, %s4414_s25 }
0x1996   :  { %v2270_v40 = vpop.xlane.xlu1 %2269 }
0x1997   :  { %v2272_v44 = vsub.f32 %v2260_v33, %v2270_v40 }
0x1999   :  { %v2275_v45 = vmul.f32 1.442695, %v2272_v44 }
0x199a   :  { %v2338_v41 = vpop.permute.xlu1 %2337 }
0x199b   :  { %v2343_v43 = vsel %vm332_vm3, %v2338_v41, 0  ;;  %3611 = vpow2.f32 %v2275_v45 }
0x199c   :  { %3453 = vmatpush3.bf16.msra.mxu0 %v2343_v43 }
0x199d   :  { %3464 = vmatprep.subr.bf16.mxu0 %v3663_v19 }
0x199e   :  { %v2440_v11 = vpop.permute.xlu1 %2439 }
0x199f   :  { %v2445_v12 = vsel %vm207_vm2, %v2440_v11, 0 }
0x19a5   :  { %v3612_v61 = vpop.eup %3611 }
0x19a6   :  { %v2280_v63 = vsel %vm207_vm2, %v3612_v61, 0.0 }
0x19ca   :  { %v2111_v46 = vpop.f32.mrb[68].mxu1 }
0x19cb   :  { %v4243_v47 = vadd.f32 %v2158_v27, %v2111_v46  ;;  %v3426_v48 = vpop.f32.mrb[69].mxu1 }
0x19cc   :  { %v2114_v49 = vpop.f32.mrb[70].mxu1 }
0x19cd   :  { %v4245_v50 = vadd.f32 %v2161_v29, %v2114_v49  ;;  %v3427_v52 = vpop.f32.mrb[71].mxu1  ;;  %v2490_v29 = vpop.permute.xlu1 %2489 }
0x19ce   :  { %v2495_v36 = vsel %vm207_vm2, %v2490_v29, 0 }
0x19d2   :  { %v2209_v54 = vpop.f32.mrb[72].mxu1 }
0x19d3   :  { %v2210_v55 = vadd.f32 %v2209_v54, %v3835_v59  ;;  %v3438_v56 = vpop.f32.mrb[73].mxu1 }
0x19d4   :  { %v2212_v57 = vpop.f32.mrb[74].mxu1 }
0x19d5   :  { %v3439_v58 = vpop.f32.mrb[75].mxu1  ;;  %v2265_v3 = vsel %vm207_vm2, %v2210_v55, -inf }
0x19d6   :  { %2266 = vmax.xlane.f32.xlu0 %v2265_v3 }
0x19da   :  { %2281 = vadd.xlane.f32.xlu0 %v2280_v63 }
0x1a63   :  { %v2267_v5 = vpop.xlane.xlu0 %2266 }
0x1a64   :  { %v2271_v2 = vsub.f32 %v2210_v55, %v2267_v5 }
0x1a66   :  { %v2273_v4 = vmul.f32 1.442695, %v2271_v2 }
0x1a67   :  { %v2282_v7 = vpop.xlane.xlu0 %2281 }
0x1a68   :  { %3613 = vpow2.f32 %v2273_v4 }
0x1a69   :  { %3615 = vrcp.f32 %v2282_v7 }
0x1a72   :  { %v3614_v8 = vpop.eup %3613 }
0x1a73   :  { %v3616_v51 = vpop.eup %3615  ;;  %v2277_v9 = vsel %vm207_vm2, %v3614_v8, 0.0 }
0x1a74   :  { %v2286_v10 = vmul.f32 %v3616_v51, %v3612_v61  ;;  %2278 = vadd.xlane.f32.xlu0 %v2277_v9 }
0x1a76   :  { %v2288_v53 = vpack.c.bf16 %v2286_v10, %v2286_v10 }
0x1a78   :  { %3455 = vmatmul.mubr.msk.bf16.vlgmr.msra.gmra.mrb[68].mxu0 %vm207_vm2, %v2288_v53 }
0x1a79   :  { %3465 = vmatpush3.bf16.xpose.msra.mxu0 %v2445_v12  ;;  %3466 = vmatprep.mubr.msk.bf16.mxu0 %vm3664_vm1, %v3663_v19 }
0x1a7a   :  { %3476 = vmatprep.subr.bf16.mxu0 %v3663_v19 }
0x1a8a   :  { %2289 = vrot.lane.b32.xlu0 %v4110_v32, %s3673_s18  ;;  %s2996_s18 = sshll.u32 %s3677_s29, 4  ;;  %s2997_s18 = int_to_ptr.vmem [resolvable:$true] %s2996_s18 }
0x1a8b   :  { %p3644_p1 = scmp.lt.s32.totalorder %s2997_s18, %s2997_s18 }
0x1a8e   :  { %2437 = vrot.lane.b32.xlu0 %v4110_v32, %s4414_s25 }
0x1b01   :  { %v2279_v13 = vpop.xlane.xlu0 %2278 }
0x1b02   :  { %3617 = vrcp.f32 %v2279_v13  ;;  %v3082_v13 = vld [vmem:[%s4396_s6 + $0x1c] sm:$0xf]  ;;  %s3639_s6 = scalar_lea.vmem %s2997_s18, 256 }
0x1b03   :  { %p3640_p0 = scmp.ne.s32.totalorder %s2997_s18, %s3639_s6  ;;  %p3645_p2 = scmp.lt.s32.totalorder %s3639_s6, %s3639_s6 }
0x1b05   :  { %v2290_v14 = vpop.permute.xlu0 %2289  ;;  %p3646_p3 = por %p3645_p2, %p3644_p1 }
0x1b06   :  { %v2295_v15 = vsel %vm332_vm3, %v2290_v14, 0  ;;  %v2664_v14 = vsel %vm332_vm3, %v3082_v13, 0 }
0x1b07   :  { %3447 = vmatpush3.bf16.msra.mxu1 %v2295_v15  ;;  %p3647_p4 = pnand %p3646_p3, %p3640_p0 }
0x1b08   :  { %3458 = vmatprep.subr.bf16.mxu1 %v3663_v19 }
0x1b09   :  { %v2438_v16 = vpop.permute.xlu0 %2437 }
0x1b0a   :  { %3467 = vmatmul.mubr.msk.bf16.vlgmr.msra.gmra.mrb[72].mxu0 %vm207_vm2, %v2438_v16 }
0x1b0b   :  { %3478 = vmatprep.mubr.msk.bf16.mxu0 %vm3664_vm1, %v3663_v19 }
0x1b0c   :  { %v3618_v1 = vpop.eup %3617 }
0x1b0d   :  { %v2285_v17 = vmul.f32 %v3618_v1, %v3614_v8 }
0x1b0f   :  { %v2287_v18 = vpack.c.bf16 %v2285_v17, %v2285_v17 }
0x1b11   :  { %3449 = vmatmul.mubr.msk.bf16.vlgmr.msra.gmra.mrb[76].mxu1 %vm207_vm2, %v2287_v18 }
0x1b12   :  { %3460 = vmatprep.mubr.msk.bf16.mxu1 %vm3664_vm1, %v3663_v19  ;;  %3459 = vmatpush3.bf16.msra.mxu1 %v2392_v23 }
0x1b13   :  { %3470 = vmatprep.subr.bf16.mxu1 %v3663_v19 }
0x1b4b   :  { %v2379_v6 = vpop.f32.mrb[68].mxu0 }
0x1b4c   :  { %v3456_v20 = vpop.f32.mrb[69].mxu0 }
0x1b4d   :  { %v2382_v21 = vpop.f32.mrb[70].mxu0 }
0x1b4e   :  { %v3457_v22 = vpop.f32.mrb[71].mxu0 }
0x1bdd   :  { %v2481_v24 = vpop.f32.mrb[72].mxu0 }
0x1bde   :  { %v2482_v25 = vadd.f32 %v2481_v24, %v3835_v59  ;;  %v3468_v26 = vpop.f32.mrb[73].mxu0  ;;  %v2488_v59 = vpop.permute.xlu1 %2487 }
0x1bdf   :  { %v2484_v27 = vpop.f32.mrb[74].mxu0 }
0x1be0   :  { %v3469_v28 = vpop.f32.mrb[75].mxu0  ;;  %v2537_v39 = vsel %vm207_vm2, %v2482_v25, -inf }
0x1be1   :  { %2538 = vmax.xlane.f32.xlu0 %v2537_v39 }
0x1be4   :  { %v2331_v30 = vpop.f32.mrb[76].mxu1 }
0x1be5   :  { %v2385_v31 = vpack.c.bf16 %v2379_v6, %v2331_v30  ;;  %v3450_v33 = vpop.f32.mrb[77].mxu1 }
0x1be6   :  { %v2334_v34 = vpop.f32.mrb[78].mxu1 }
0x1be7   :  { %v3451_v37 = vpop.f32.mrb[79].mxu1  ;;  %3461 = vmatmul.mubr.msk.bf16.vlgmr.msra.gmra.mrb[80].mxu1 %vm207_vm2, %v2385_v31 }
0x1be8   :  { %3471 = vmatpush3.bf16.xpose.msra.mxu1 %v2495_v36  ;;  %3472 = vmatprep.mubr.msk.bf16.mxu1 %vm3664_vm1, %v3663_v19 }
0x1be9   :  { %3482 = vmatprep.subr.bf16.mxu1 %v3663_v19 }
0x1bef   :  { %3473 = vmatmul.mubr.msk.bf16.vlgmr.msra.gmra.mrb[84].mxu1 %vm207_vm2, %v2488_v59 }
0x1bf0   :  { %3484 = vmatprep.mubr.msk.bf16.mxu1 %vm3664_vm1, %v3663_v19 }
0x1c6e   :  { %v2539_v38 = vpop.xlane.xlu0 %2538 }
0x1c6f   :  { %v2543_v40 = vsub.f32 %v2482_v25, %v2539_v38  ;;  %v3085_v25 = vld [vmem:[%s4397_s7 + $0x1] ss:$0 sm:$0xff] }
0x1c71   :  { %v2545_v41 = vmul.f32 1.442695, %v2543_v40 }
0x1c73   :  { %3619 = vpow2.f32 %v2545_v41 }
0x1c7d   :  { %v3620_v43 = vpop.eup %3619 }
0x1c7e   :  { %v2549_v44 = vsel %vm207_vm2, %v3620_v43, 0.0 }
0x1c7f   :  { %2550 = vadd.xlane.f32.xlu0 %v2549_v44 }
0x1cba   :  { %v2428_v45 = vpop.f32.mrb[80].mxu1 }
0x1cbb   :  { %v2435_v46 = vadd.f32 %v2428_v45, %v4243_v47  ;;  %v3462_v48 = vpop.f32.mrb[81].mxu1  ;;  %v3541_v45 = vld [vmem:[%s4400_s10 + $0x10] sm:$0xff]  }
0x1cbc   :  { %v2431_v49 = vpop.f32.mrb[82].mxu1 }
0x1cbd   :  { %v2436_v52 = vadd.f32 %v2431_v49, %v4245_v50  ;;  %v3463_v54 = vpop.f32.mrb[83].mxu1 }
0x1cc2   :  { %v2531_v55 = vpop.f32.mrb[84].mxu1 }
0x1cc3   :  { %v2532_v56 = vadd.f32 %v2531_v55, %v3837_v60  ;;  %v3474_v57 = vpop.f32.mrb[85].mxu1 }
0x1cc4   :  { %v2534_v58 = vpop.f32.mrb[86].mxu1 }
0x1cc5   :  { %v3475_v3 = vpop.f32.mrb[87].mxu1  ;;  %v2540_v61 = vsel %vm207_vm2, %v2532_v56, -inf  ;;  %v3088_v58 = vld [vmem:[%s4398_s8 + $0x1] ss:$0 sm:$0xff] }
0x1cc6   :  { %2541 = vmax.xlane.f32.xlu1 %v2540_v61 }
0x1cd7   :  { %2609 = vrot.lane.b32.xlu1 %v4112_v35, %s4415_s28 }
0x1d0c   :  { %v2551_v7 = vpop.xlane.xlu0 %2550 }
0x1d53   :  { %v2542_v63 = vpop.xlane.xlu1 %2541 }
0x1d54   :  { %v2544_v5 = vsub.f32 %v2532_v56, %v2542_v63 }
0x1d56   :  { %v2547_v47 = vmul.f32 1.442695, %v2544_v5 }
0x1d57   :  { %v2610_v2 = vpop.permute.xlu1 %2609 }
0x1d58   :  { %3621 = vpow2.f32 %v2547_v47  ;;  %v2615_v50 = vsel %vm332_vm3, %v2610_v2, 0  ;;  %v3089_v47 = vld [vmem:[%s4399_s9 + $0x1] ss:$0 sm:$0xff] }
0x1d59   :  { %3483 = vmatpush3.bf16.msra.mxu1 %v2615_v50  ;;  %3623 = vrcp.f32 %v2551_v7  ;;  %v3543_v7 = vld [vmem:[%s4402_s12 + $0x20] sm:$0xff]  }
0x1d5a   :  { %3494 = vmatprep.subr.bf16.mxu1 %v3663_v19 }
0x1d62   :  { %v3622_v60 = vpop.eup %3621 }
0x1d63   :  { %v2552_v4 = vsel %vm207_vm2, %v3622_v60, 0.0  ;;  %v3624_v35 = vpop.eup %3623 }
0x1d64   :  { %2553 = vadd.xlane.f32.xlu0 %v2552_v4  ;;  %v2557_v51 = vmul.f32 %v3624_v35, %v3620_v43  ;;  %v3544_v35 = vld [vmem:[%s4402_s12 + $0x28] sm:$0xff]  }
0x1d66   :  { %v2559_v11 = vpack.c.bf16 %v2557_v51, %v2557_v51  ;;  %v3546_v51 = vld [vmem:[%s4402_s12 + $0x38] sm:$0xff]  }
0x1d7a   :  { %2561 = vrot.lane.b32.xlu0 %v4110_v32, %s4415_s28 }
0x1df1   :  { %v2554_v8 = vpop.xlane.xlu0 %2553 }
0x1df2   :  { %3625 = vrcp.f32 %v2554_v8  ;;  %v3545_v8 = vld [vmem:[%s4402_s12 + $0x30] sm:$0xff]  }
0x1df5   :  { %v2562_v9 = vpop.permute.xlu0 %2561 }
0x1df6   :  { %v2567_v10 = vsel %vm332_vm3, %v2562_v9, 0  ;;  %v3095_v9 = vld [vmem:[%s4401_s11 + $0x1] ss:$0 sm:$0xff] }
0x1df7   :  { %3477 = vmatpush3.bf16.msra.mxu0 %v2567_v10 }
0x1df8   :  { %3488 = vmatprep.subr.bf16.mxu0 %v3663_v19 }
0x1dfa   :  { %3479 = vmatmul.mubr.msk.bf16.vlgmr.msra.gmra.mrb[76].mxu0 %vm207_vm2, %v2559_v11 }
0x1dfb   :  { %3490 = vmatprep.mubr.msk.bf16.mxu0 %vm3664_vm1, %v3663_v19  ;;  %3489 = vmatpush3.bf16.msra.mxu0 %v2664_v14 }
0x1dfc   :  { %v3626_v53 = vpop.eup %3625  ;;  %3502 = vmatprep.subr.bf16.mxu0 %v3663_v19 }
0x1dfd   :  { %v2558_v32 = vmul.f32 %v3626_v53, %v3622_v60 }
0x1dff   :  { %v2560_v12 = vpack.c.bf16 %v2558_v32, %v2558_v32 }
0x1e01   :  { %3485 = vmatmul.mubr.msk.bf16.vlgmr.msra.gmra.mrb[88].mxu1 %vm207_vm2, %v2560_v12 }
0x1e02   :  { %3498 = vmatprep.mubr.msk.bf16.mxu1 %vm3664_vm1, %v3663_v19  ;;  %3495 = vmatpush3.bf16.msra.mxu1 %v3541_v45 }
0x1e03   :  { %3496 = vmatprep.subr.bf16.mxu1 %v3663_v19 }
0x1ecd   :  { %v2603_v15 = vpop.f32.mrb[76].mxu0 }
0x1ece   :  { %v3480_v16 = vpop.f32.mrb[77].mxu0 }
0x1ecf   :  { %v2606_v1 = vpop.f32.mrb[78].mxu0 }
0x1ed0   :  { %v3481_v17 = vpop.f32.mrb[79].mxu0 }
0x1ed4   :  { %v2651_v18 = vpop.f32.mrb[88].mxu1 }
0x1ed5   :  { %v2657_v6 = vpack.c.bf16 %v2651_v18, %v2603_v15  ;;  %v3486_v20 = vpop.f32.mrb[89].mxu1 }
0x1ed6   :  { %v2654_v21 = vpop.f32.mrb[90].mxu1 }
0x1ed7   :  { %v3487_v22 = vpop.f32.mrb[91].mxu1  ;;  %3491 = vmatmul.mubr.msk.bf16.vlgmr.msra.gmra.mrb[80].mxu0 %vm207_vm2, %v2657_v6 }
0x1ed8   :  { %3510 = vmatprep.mubr.msk.bf16.mxu0 %vm3664_vm1, %v3663_v19  ;;  %3503 = vmatpush3.bf16.msra.mxu0 %v3543_v7 }
0x1ed9   :  { %3504 = vmatprep.subr.bf16.mxu0 %v3663_v19 }
0x1edc   :  { %3505 = vmatpush3.bf16.msra.mxu0 %v3544_v35 }
0x1edd   :  { %3506 = vmatprep.subr.bf16.mxu0 %v3663_v19 }
0x1ee0   :  { %3507 = vmatpush3.bf16.msra.mxu0 %v3545_v8 }
0x1ee1   :  { %3508 = vmatprep.subr.bf16.mxu0 %v3663_v19 }
0x1ee4   :  { %3509 = vmatpush3.bf16.msra.mxu0 %v3546_v51 }
0x1faa   :  { %v2700_v42 = vpop.f32.mrb[80].mxu0 }
0x1fab   :  { %v2707_v23 = vadd.f32 %v2700_v42, %v2435_v46  ;;  %v3492_v24 = vpop.f32.mrb[81].mxu0  ;;  %v3542_v46 = vld [vmem:[%s4400_s10 + $0x18] sm:$0xff]  }
0x1fac   :  { %v2703_v26 = vpop.f32.mrb[82].mxu0  ;;  %3497 = vmatpush3.bf16.msra.mxu1 %v3542_v46 }
0x1fad   :  { %v2709_v27 = vadd.f32 %v2707_v23, %v4080_v62  ;;  %v2708_v28 = vadd.f32 %v2703_v26, %v2436_v52  ;;  %v3493_v39 = vpop.f32.mrb[83].mxu0 }
0x1faf   :  { %v4315_v29 = vadd.f32 %v3085_v25, %v2709_v27  ;;  %v2710_v30 = vadd.f32 %v2708_v28, %v4083_v0 }
0x1fb1   :  { %v4318_v31 = vadd.f32 %v3085_v25, %v2710_v30  ;;  %v2725_v33 = vsel %vm87_vm0, %v4315_v29, 0.0 }
0x1fb2   :  { %2726 = vadd.xlane.f32.xlu1 %v2725_v33  ;;  %v3113_v33 = vld [vmem:[%s4403_s13 + $0x1] ss:$0 sm:$0xff] }
0x1fb3   :  { %v2728_v34 = vsel %vm87_vm0, %v4318_v31, 0.0 }
0x1fb4   :  { %2729 = vadd.xlane.f32.xlu0 %v2728_v34 }
0x203f   :  { %v2727_v36 = vpop.xlane.xlu1 %2726 }
0x2040   :  { %v2731_v37 = vmul.f32 0.03125, %v2727_v36 }
0x2041   :  { %v2730_v59 = vpop.xlane.xlu0 %2729 }
0x2042   :  { %v2733_v62 = vsub.f32 %v4315_v29, %v2731_v37  ;;  %v2732_v38 = vmul.f32 0.03125, %v2730_v59 }
0x2044   :  { %v2734_v40 = vsub.f32 %v4318_v31, %v2732_v38  ;;  %v2735_v41 = vmul.f32 %v2733_v62, %v2733_v62 }
0x2046   :  { %v2737_v0 = vsel %vm87_vm0, %v2735_v41, 0.0  ;;  %v2736_v43 = vmul.f32 %v2734_v40, %v2734_v40 }
0x2047   :  { %2738 = vadd.xlane.f32.xlu0 %v2737_v0 }
0x2048   :  { %v2740_v44 = vsel %vm87_vm0, %v2736_v43, 0.0 }
0x2049   :  { %2741 = vadd.xlane.f32.xlu1 %v2740_v44 }
0x20d4   :  { %v2739_v48 = vpop.xlane.xlu0 %2738 }
0x20d5   :  { %v2743_v49 = vmul.f32 0.03125, %v2739_v48 }
0x20d6   :  { %v2742_v52 = vpop.xlane.xlu1 %2741 }
0x20d7   :  { %v2745_v54 = vadd.f32 1e-05, %v2743_v49  ;;  %v2744_v55 = vmul.f32 0.03125, %v2742_v52 }
0x20d9   :  { %3627 = vrsqrt.f32 %v2745_v54  ;;  %v2746_v56 = vadd.f32 1e-05, %v2744_v55 }
0x20db   :  { %3629 = vrsqrt.f32 %v2746_v56 }
0x20e3   :  { %v3628_v57 = vpop.eup %3627 }
0x20e4   :  { %v2749_v3 = vmul.f32 %v3628_v57, %v2733_v62 }
0x20e5   :  { %v3630_v61 = vpop.eup %3629 }
0x20e6   :  { %v2757_v63 = vmul.f32 %v3088_v58, %v2749_v3  ;;  %v2750_v5 = vmul.f32 %v3630_v61, %v2734_v40 }
0x20e8   :  { %v2758_v2 = vmul.f32 %v3088_v58, %v2750_v5  ;;  %v2765_v50 = vadd.f32 %v3089_v47, %v2757_v63  ;;  %v3114_v5 = vld [vmem:[%s4404_s14] ss:$0 sm:$0xff] }
0x20ea   :  { %v2766_v60 = vadd.f32 %v3089_v47, %v2758_v2 }
0x20ec   :  { %v2767_v4 = vpack.c.bf16 %v2766_v60, %v2765_v50  ;;  %v3115_v50 = vld [vmem:[%s4405_s15] ss:$0 sm:$0xff] }
0x20ee   :  { %3499 = vmatmul.mubr.msk.bf16.vlgmr.msra.gmra.mrb[92].mxu1 %vm87_vm0, %v2767_v4 }
0x21c1   :  { %v2830_v10 = vpop.f32.mrb[92].mxu1 }
0x21c2   :  { %v2831_v11 = vadd.f32 %v3095_v9, %v2830_v10  ;;  %v3500_v53 = vpop.f32.mrb[93].mxu1 }
0x21c3   :  { %v2833_v32 = vpop.f32.mrb[94].mxu1 }
0x21c4   :  { %v2839_v12 = vmul.f32 0.044715, %v2831_v11  ;;  %v2834_v13 = vadd.f32 %v3095_v9, %v2833_v32  ;;  %v3501_v14 = vpop.f32.mrb[95].mxu1  ;;  %v2837_v24 = vmul.f32 0.5, %v2831_v11 }
0x21c6   :  { %v2841_v15 = vmul.f32 %v2839_v12, %v2831_v11  ;;  %v2840_v16 = vmul.f32 0.044715, %v2834_v13  ;;  %v2838_v25 = vmul.f32 0.5, %v2834_v13 }
0x21c8   :  { %v2843_v1 = vmul.f32 %v2841_v15, %v2831_v11  ;;  %v2842_v17 = vmul.f32 %v2840_v16, %v2834_v13 }
0x21ca   :  { %v2845_v18 = vadd.f32 %v2843_v1, %v2831_v11  ;;  %v2844_v6 = vmul.f32 %v2842_v17, %v2834_v13 }
0x21cc   :  { %v2847_v20 = vmul.f32 0.7978846, %v2845_v18  ;;  %v2846_v19 = vadd.f32 %v2844_v6, %v2834_v13 }
0x21ce   :  { %3631 = vtanh.f32 %v2847_v20  ;;  %v2848_v21 = vmul.f32 0.7978846, %v2846_v19 }
0x21d0   :  { %3633 = vtanh.f32 %v2848_v21 }
0x21d8   :  { %v3632_v22 = vpop.eup %3631 }
0x21d9   :  { %v2851_v42 = vadd.f32 1.0, %v3632_v22 }
0x21da   :  { %v3634_v23 = vpop.eup %3633 }
0x21db   :  { %v2852_v26 = vadd.f32 1.0, %v3634_v23  ;;  %v2853_v27 = vmul.f32 %v2851_v42, %v2837_v24 }
0x21dd   :  { %v2854_v28 = vmul.f32 %v2852_v26, %v2838_v25 }
0x21df   :  { %v2855_v39 = vpack.c.bf16 %v2854_v28, %v2853_v27 }
0x21e1   :  { %3511 = vmatmul.mubr.msk.bf16.vlgmr.msra.gmra.mrb[84].mxu0 %vm1461_vm4, %v2855_v39 }
0x22b4   :  { %v2926_v30 = vpop.f32.mrb[84].mxu0 }
0x22b5   :  { %v2933_v34 = vadd.f32 %v2926_v30, %v4315_v29  ;;  %v3512_v36 = vpop.f32.mrb[85].mxu0 }
0x22b6   :  { %v2929_v37 = vpop.f32.mrb[86].mxu0 }
0x22b7   :  { %v2934_v59 = vadd.f32 %v2929_v37, %v4318_v31  ;;  %v3513_v62 = vpop.f32.mrb[87].mxu0  ;;  %v2943_v38 = vadd.f32 %v3113_v33, %v2933_v34 }
0x22b9   :  { %v2947_v40 = vsel %vm87_vm0, %v2943_v38, 0.0  ;;  %v2944_v41 = vadd.f32 %v3113_v33, %v2934_v59 }
0x22ba   :  { %2948 = vadd.xlane.f32.xlu0 %v2947_v40 }
0x22bb   :  { %v2950_v0 = vsel %vm87_vm0, %v2944_v41, 0.0 }
0x22bc   :  { %2951 = vadd.xlane.f32.xlu1 %v2950_v0 }
0x2347   :  { %v2949_v43 = vpop.xlane.xlu0 %2948 }
0x2348   :  { %v2953_v44 = vmul.f32 0.03125, %v2949_v43 }
0x2349   :  { %v2952_v45 = vpop.xlane.xlu1 %2951 }
0x234a   :  { %v2955_v46 = vsub.f32 %v2943_v38, %v2953_v44  ;;  %v2954_v48 = vmul.f32 0.03125, %v2952_v45 }
0x234c   :  { %v2956_v49 = vsub.f32 %v2944_v41, %v2954_v48  ;;  %v2957_v29 = vmul.f32 %v2955_v46, %v2955_v46 }
0x234e   :  { %v2959_v52 = vsel %vm87_vm0, %v2957_v29, 0.0  ;;  %v2958_v54 = vmul.f32 %v2956_v49, %v2956_v49 }
0x234f   :  { %2960 = vadd.xlane.f32.xlu0 %v2959_v52 }
0x2350   :  { %v2962_v31 = vsel %vm87_vm0, %v2958_v54, 0.0 }
0x2351   :  { %2963 = vadd.xlane.f32.xlu1 %v2962_v31 }
0x23dc   :  { %v2961_v55 = vpop.xlane.xlu0 %2960 }
0x23dd   :  { %v2965_v56 = vmul.f32 0.03125, %v2961_v55 }
0x23de   :  { %v2964_v57 = vpop.xlane.xlu1 %2963 }
0x23df   :  { %v2967_v58 = vadd.f32 1e-05, %v2965_v56  ;;  %v2966_v3 = vmul.f32 0.03125, %v2964_v57 }
0x23e1   :  { %3635 = vrsqrt.f32 %v2967_v58  ;;  %v2968_v61 = vadd.f32 1e-05, %v2966_v3 }
0x23e3   :  { %3637 = vrsqrt.f32 %v2968_v61 }
0x23eb   :  { %v3636_v63 = vpop.eup %3635 }
0x23ec   :  { %v2971_v47 = vmul.f32 %v3636_v63, %v2955_v46 }
0x23ed   :  { %v3638_v2 = vpop.eup %3637 }
0x23ee   :  { %v2972_v60 = vmul.f32 %v3638_v2, %v2956_v49  ;;  %v2979_v4 = vmul.f32 %v3114_v5, %v2971_v47 }
0x23f0   :  { %v2980_v7 = vmul.f32 %v3114_v5, %v2972_v60  ;;  %v2987_v35 = vadd.f32 %v3115_v50, %v2979_v4 }
0x23f2   :  { %v2988_v8 = vadd.f32 %v3115_v50, %v2980_v7  ;;  %2989 = vst.msk [vmem:[#allocation2] sm:$0xff] %vm87_vm0, %v2987_v35 }
0x23f4   :  { %2990 = vst.msk [vmem:[#allocation2 + $0x8] sm:$0xff] %vm87_vm0, %v2988_v8 }
0x23f5   :  { %3650 = shalt.err (!%p3647_p4)
}
0x23f6   :  { %s3651_s19 = scalar_lea.hbm %s4406_s16, 256 }
0x23f7   :  { %p3652_p5 = scmp.ne.s32.totalorder %s4406_s16, %s3651_s19  ;;  %p3655_p6 = scmp.lt.u32.totalorder %s3651_s19, %s4406_s16 }
0x23f9   :  { %p3657_p7 = pnand %p3655_p6, %p3652_p5 }
0x23fb   :  { %3660 = shalt.err (!%p3657_p7)
}
0x23fc   :  { %s3678_s21 = smov 128   ;;  %s3679_s23 = smov 8  }
0x23fd   :  { %3002 = dma.vmem_to_hbm [thread:$0]  %s2997_s18, 256, %s4406_s16, [#allocation3], %s3678_s21, %s3678_s21, %s3679_s23  }
0x23fe   :  { %3661 = dma.done.wait [#allocation3], 256  }
0x23ff   :  { %3662 = vsyncadd [#allocation3], 4294967040 }
0x2400   :  { %3006 = vsyncpa [#allocation3], 1 }

</bundles_post_ra>
